<compile_context>
chip_gen: v7x
topology: tpu7x:2x2x1
jax: 0.10.0
libtpu: 0.0.40
codegen_flags: <defaults>
</compile_context>

<pallas_src>
import jax
import jax.numpy as jnp
from jax.experimental import pallas as pl
from jax.experimental.pallas import tpu as pltpu

# Small, forward-consistent sizes.
S, B = 8, 8                     # sequence length, batch (B=8 fills all f32 sublanes)
D_IN, D_PRE = 4, 32             # input features, pre-MLP hidden
R_IN, H = 16, 32                # rnn input size, rnn hidden size
D_POST, D_OUT = 32, 4           # post-MLP hidden, output features

FOURH = 4 * H                   # 128 = packed gate lanes (i | f | g | o), one full lane group
OUT_PAD = 128                   # lane-dense padded output width


def frf_kernel(ts_ref,
               w1_ref, b1_ref, w2_ref, b2_ref,          # pre-FF (weights stored (in, out))
               wih_ref, whh_ref, blstm_ref,             # LSTM   (gate-packed, prescaled)
               w3_ref, b3_ref, w4_ref, b4_ref,          # post-FF (w3 row-padded, w4/b4 col-padded)
               out_ref):                                # (S*B, OUT_PAD) lane-dense output
    # ---- pre feed-forward net, whole sequence as one 2D matmul chain ----
    x = ts_ref[...]                                                          # (S*B, D_IN)
    z1 = jnp.maximum(
        jnp.dot(x, w1_ref[...], preferred_element_type=jnp.float32) + b1_ref[...], 0.0)
    pre = jnp.dot(z1, w2_ref[...], preferred_element_type=jnp.float32) + b2_ref[...]

    # ---- hoisted LSTM input projection + combined (prescaled) bias for ALL timesteps ----
    gx = (jnp.dot(pre, wih_ref[...], preferred_element_type=jnp.float32)
          + blstm_ref[...])                                                  # (S*B, 4*H)

    # ---- loop-invariant vregs (hoisted: broadcasts are not CSE'd inside loops) ----
    whh = whh_ref[...]                                                       # (4*H, 4*H), rows H.. zero
    w3 = w3_ref[...]                                                         # (4*H, D_POST), rows H.. zero
    w4 = w4_ref[...]                                                         # (D_POST, OUT_PAD)
    b3_b = jnp.broadcast_to(b3_ref[...], (B, D_POST))
    b4_b = jnp.broadcast_to(b4_ref[...], (B, OUT_PAD))
    lane = jax.lax.broadcasted_iota(jnp.int32, (B, FOURH), 1)
    is_g = jnp.logical_and(lane >= 2 * H, lane < 3 * H)
    post_s = jnp.where(is_g, 1.0, 0.5).astype(jnp.float32)   # sigmoid-via-tanh post scale
    post_b = jnp.where(is_g, 0.0, 0.5).astype(jnp.float32)   # sigmoid-via-tanh post bias

    # ---- LSTM recurrence (torch gate order i, f, g, o), zero init, fully unrolled ----
    h = jnp.zeros((B, FOURH), jnp.float32)
    c = jnp.zeros((B, FOURH), jnp.float32)
    for t in range(S):                                   # S static -> fully unrolled
        gates = gx[t * B:(t + 1) * B, :] + jnp.dot(
            h, whh, preferred_element_type=jnp.float32)                      # (B, 4*H)
        # Single EUP pass over all 4 packed gates; i/f/o pre-activations were pre-scaled by 0.5
        # at prepare time so sigmoid(z) = 0.5 * tanh(0.5 z) + 0.5 and g stays a plain tanh.
        tg = jnp.tanh(gates)
        act = tg * post_s + post_b                       # lanes: [i | f | g | o]
        i_g = act                                        # i already at lanes [0, H)
        f_g = pltpu.roll(act, 96, 1)                     # lanes [0, H) <- f   (XLU rotate)
        g_g = pltpu.roll(act, 64, 1)                     # lanes [0, H) <- g
        o_g = pltpu.roll(act, 32, 1)                     # lanes [0, H) <- o
        # Lanes [H, 128) of c/h become bounded junk; zero rows of whh/w3 mask it (see header).
        c = f_g * c + i_g * g_g
        h = o_g * jnp.tanh(c)
        # ---- interleaved post-FF for this step (independent of later steps -> free filler) ----
        z3 = jnp.maximum(jnp.dot(h, w3, preferred_element_type=jnp.float32) + b3_b, 0.0)
        out_ref[t * B:(t + 1) * B, :] = (
            jnp.dot(z3, w4, preferred_element_type=jnp.float32) + b4_b)      # unmasked lane-dense vst


def prepare_params(p):
    """One-time (model-load) packing of parameters for the kernel.

    * Weights already stored (in, out) so the kernel does x @ W.
    * Folds the 0.5 sigmoid-via-tanh pre-scale of the i/f/o gates into wih/whh columns and bias.
    * Zero-pads whh / w3 rows [H, 4H) so junk lanes of the packed h/c state never contribute.
    * Zero-pads w4 / b4 columns to OUT_PAD for lane-dense unmasked output stores.
    Called ONCE; the returned dict is reused for every frf_forward call.
    """
    lane = jnp.arange(FOURH)
    is_g = jnp.logical_and(lane >= 2 * H, lane < 3 * H)
    pre_scale = jnp.where(is_g, 1.0, 0.5).astype(jnp.float32)                # (4*H,)

    wih_s = p["wih"] * pre_scale[None, :]                                    # (R_IN, 4*H)
    whh_s = p["whh"] * pre_scale[None, :]                                    # (H,    4*H)
    whh_p = jnp.zeros((FOURH, FOURH), jnp.float32).at[:H, :].set(whh_s)      # rows H.. zero
    blstm = ((p["bih"] + p["bhh"]) * pre_scale)[None, :]                     # (1,    4*H)

    w3_p = jnp.zeros((FOURH, D_POST), jnp.float32).at[:H, :].set(p["w3"])    # rows H.. zero
    w4_p = jnp.zeros((D_POST, OUT_PAD), jnp.float32).at[:, :D_OUT].set(p["w4"])
    b4_p = jnp.zeros((1, OUT_PAD), jnp.float32).at[:, :D_OUT].set(p["b4"])

    return {
        "w1": p["w1"], "b1": p["b1"][None, :],
        "w2": p["w2"], "b2": p["b2"][None, :],
        "wih": wih_s, "whh": whh_p, "blstm": blstm,
        "w3": w3_p, "b3": p["b3"][None, :],
        "w4": w4_p, "b4": b4_p,
    }


@jax.jit
def frf_forward(ts, pp):
    """ts: (S, B, D_IN) time-major. pp: prepare_params() output. Returns (B, S, D_OUT)."""
    x2d = ts.reshape(S * B, D_IN)                        # reshapes stay in the wrapper (HBM metadata)
    args = (x2d,
            pp["w1"], pp["b1"], pp["w2"], pp["b2"],
            pp["wih"], pp["whh"], pp["blstm"],
            pp["w3"], pp["b3"], pp["w4"], pp["b4"])

    vmem = pl.BlockSpec(memory_space=pltpu.MemorySpace.VMEM)
    out2d = pl.pallas_call(
        frf_kernel,
        out_shape=jax.ShapeDtypeStruct((S * B, OUT_PAD), jnp.float32),
        in_specs=[vmem] * len(args),
        out_specs=vmem,
    )(*args)

    out = out2d[:, :D_OUT].reshape(S, B, D_OUT)
    return jnp.transpose(out, (1, 0, 2))                 # output.transpose(0, 1)


def frf_reference(ts, p):
    """Pure-JAX reference of the same forward pass (unpadded math, raw params)."""
    x = ts.reshape(S * B, D_IN)
    z1 = jnp.maximum(x @ p["w1"] + p["b1"], 0.0)
    pre = (z1 @ p["w2"] + p["b2"]).reshape(S, B, R_IN)
    h = jnp.zeros((B, H), jnp.float32)
    c = jnp.zeros((B, H), jnp.float32)
    hs = []
    for t in range(S):
        gates = pre[t] @ p["wih"] + h @ p["whh"] + p["bih"] + p["bhh"]
        i = jax.nn.sigmoid(gates[:, :H])
        f = jax.nn.sigmoid(gates[:, H:2 * H])
        g = jnp.tanh(gates[:, 2 * H:3 * H])
        o = jax.nn.sigmoid(gates[:, 3 * H:])
        c = f * c + i * g
        h = o * jnp.tanh(c)
        hs.append(h)
    hs = jnp.stack(hs).reshape(S * B, H)
    z3 = jnp.maximum(hs @ p["w3"] + p["b3"], 0.0)
    out = (z3 @ p["w4"] + p["b4"]).reshape(S, B, D_OUT)
    return jnp.transpose(out, (1, 0, 2))


def init_params(key):
    ks = jax.random.split(key, 13)
    sc = 0.1
    return {
        # pre-FF: weights kept (in, out) so kernel does x @ W (PyTorch Linear is x @ W.T)
        "w1": sc * jax.random.normal(ks[0], (D_IN, D_PRE), jnp.float32),
        "b1": sc * jax.random.normal(ks[1], (D_PRE,), jnp.float32),
        "w2": sc * jax.random.normal(ks[2], (D_PRE, R_IN), jnp.float32),
        "b2": sc * jax.random.normal(ks[3], (R_IN,), jnp.float32),
        # LSTM: torch weight_ih (4H, R_IN) / weight_hh (4H, H) stored pre-transposed
        "wih": sc * jax.random.normal(ks[4], (R_IN, 4 * H), jnp.float32),
        "whh": sc * jax.random.normal(ks[5], (H, 4 * H), jnp.float32),
        "bih": sc * jax.random.normal(ks[6], (4 * H,), jnp.float32),
        "bhh": sc * jax.random.normal(ks[7], (4 * H,), jnp.float32),
        # post-FF
        "w3": sc * jax.random.normal(ks[8], (H, D_POST), jnp.float32),
        "b3": sc * jax.random.normal(ks[9], (D_POST,), jnp.float32),
        "w4": sc * jax.random.normal(ks[10], (D_POST, D_OUT), jnp.float32),
        "b4": sc * jax.random.normal(ks[11], (D_OUT,), jnp.float32),
    }


if __name__ == "__main__":
    key = jax.random.PRNGKey(0)
    k_ts, k_p = jax.random.split(key)
    ts = jax.random.normal(k_ts, (S, B, D_IN), jnp.float32)   # time-major input
    params = init_params(k_p)

    # One-time model-load packing (hoisted out of the forward path per review).
    packed = jax.tree_util.tree_map(jax.block_until_ready, prepare_params(params))

    out = jax.block_until_ready(frf_forward(ts, packed))
    ref = jax.block_until_ready(frf_reference(ts, params))

    assert out.shape == (B, S, D_OUT), out.shape
    assert jnp.allclose(out, ref, atol=1e-4, rtol=1e-4), float(jnp.max(jnp.abs(out - ref)))
    print("KERNEL_OK")
</pallas_src>

<mosaic_0001>
module attributes {stable_mosaic.version = 11 : i64} {
  func.func @frf_kernel(%arg0: memref<64x4xf32, #tpu.memory_space<vmem>>, %arg1: memref<4x32xf32, #tpu.memory_space<vmem>>, %arg2: memref<1x32xf32, #tpu.memory_space<vmem>>, %arg3: memref<32x16xf32, #tpu.memory_space<vmem>>, %arg4: memref<1x16xf32, #tpu.memory_space<vmem>>, %arg5: memref<16x128xf32, #tpu.memory_space<vmem>>, %arg6: memref<128x128xf32, #tpu.memory_space<vmem>>, %arg7: memref<1x128xf32, #tpu.memory_space<vmem>>, %arg8: memref<128x32xf32, #tpu.memory_space<vmem>>, %arg9: memref<1x32xf32, #tpu.memory_space<vmem>>, %arg10: memref<32x128xf32, #tpu.memory_space<vmem>>, %arg11: memref<1x128xf32, #tpu.memory_space<vmem>>, %arg12: memref<64x128xf32, #tpu.memory_space<vmem>>) attributes {dimension_semantics = [], scalar_prefetch = 0 : i64, scratch_operands = 0 : i64, tpu.core_type = #tpu.core_type<tc>} {
    %c0 = arith.constant 0 : index
    %c0_0 = arith.constant 0 : index
    %0 = vector.load %arg0[%c0, %c0_0] : memref<64x4xf32, #tpu.memory_space<vmem>>, vector<64x4xf32>
    %c0_1 = arith.constant 0 : index
    %c0_2 = arith.constant 0 : index
    %1 = vector.load %arg1[%c0_1, %c0_2] : memref<4x32xf32, #tpu.memory_space<vmem>>, vector<4x32xf32>
    %cst = arith.constant dense<0.000000e+00> : vector<64x32xf32>
    %2 = tpu.matmul %0, %1, %cst {dimension_numbers = #tpu.dot_dimension_numbers<[1], [0], [0], [1], [0, 0, 1, 1], [], []>} : vector<64x4xf32>, vector<4x32xf32>, vector<64x32xf32> -> vector<64x32xf32>
    %c0_3 = arith.constant 0 : index
    %c0_4 = arith.constant 0 : index
    %3 = vector.load %arg2[%c0_3, %c0_4] : memref<1x32xf32, #tpu.memory_space<vmem>>, vector<1x32xf32>
    %4 = vector.broadcast %3 : vector<1x32xf32> to vector<64x32xf32>
    %5 = arith.addf %2, %4 : vector<64x32xf32>
    %cst_5 = arith.constant 0.000000e+00 : f32
    %6 = vector.broadcast %cst_5 : f32 to vector<64x32xf32>
    %7 = arith.maximumf %5, %6 : vector<64x32xf32>
    %c0_6 = arith.constant 0 : index
    %c0_7 = arith.constant 0 : index
    %8 = vector.load %arg3[%c0_6, %c0_7] : memref<32x16xf32, #tpu.memory_space<vmem>>, vector<32x16xf32>
    %cst_8 = arith.constant dense<0.000000e+00> : vector<64x16xf32>
    %9 = tpu.matmul %7, %8, %cst_8 {dimension_numbers = #tpu.dot_dimension_numbers<[1], [0], [0], [1], [0, 0, 1, 1], [], []>} : vector<64x32xf32>, vector<32x16xf32>, vector<64x16xf32> -> vector<64x16xf32>
    %c0_9 = arith.constant 0 : index
    %c0_10 = arith.constant 0 : index
    %10 = vector.load %arg4[%c0_9, %c0_10] : memref<1x16xf32, #tpu.memory_space<vmem>>, vector<1x16xf32>
    %11 = vector.broadcast %10 : vector<1x16xf32> to vector<64x16xf32>
    %12 = arith.addf %9, %11 : vector<64x16xf32>
    %c0_11 = arith.constant 0 : index
    %c0_12 = arith.constant 0 : index
    %13 = vector.load %arg5[%c0_11, %c0_12] : memref<16x128xf32, #tpu.memory_space<vmem>>, vector<16x128xf32>
    %cst_13 = arith.constant dense<0.000000e+00> : vector<64x128xf32>
    %14 = tpu.matmul %12, %13, %cst_13 {dimension_numbers = #tpu.dot_dimension_numbers<[1], [0], [0], [1], [0, 0, 1, 1], [], []>} : vector<64x16xf32>, vector<16x128xf32>, vector<64x128xf32> -> vector<64x128xf32>
    %c0_14 = arith.constant 0 : index
    %c0_15 = arith.constant 0 : index
    %15 = vector.load %arg7[%c0_14, %c0_15] : memref<1x128xf32, #tpu.memory_space<vmem>>, vector<1x128xf32>
    %16 = vector.broadcast %15 : vector<1x128xf32> to vector<64x128xf32>
    %17 = arith.addf %14, %16 : vector<64x128xf32>
    %c0_16 = arith.constant 0 : index
    %c0_17 = arith.constant 0 : index
    %18 = vector.load %arg6[%c0_16, %c0_17] : memref<128x128xf32, #tpu.memory_space<vmem>>, vector<128x128xf32>
    %c0_18 = arith.constant 0 : index
    %c0_19 = arith.constant 0 : index
    %19 = vector.load %arg8[%c0_18, %c0_19] : memref<128x32xf32, #tpu.memory_space<vmem>>, vector<128x32xf32>
    %c0_20 = arith.constant 0 : index
    %c0_21 = arith.constant 0 : index
    %20 = vector.load %arg10[%c0_20, %c0_21] : memref<32x128xf32, #tpu.memory_space<vmem>>, vector<32x128xf32>
    %c0_22 = arith.constant 0 : index
    %c0_23 = arith.constant 0 : index
    %21 = vector.load %arg9[%c0_22, %c0_23] : memref<1x32xf32, #tpu.memory_space<vmem>>, vector<1x32xf32>
    %22 = vector.shape_cast %21 : vector<1x32xf32> to vector<1x32xf32>
    %23 = vector.broadcast %22 : vector<1x32xf32> to vector<8x32xf32>
    %c0_24 = arith.constant 0 : index
    %c0_25 = arith.constant 0 : index
    %24 = vector.load %arg11[%c0_24, %c0_25] : memref<1x128xf32, #tpu.memory_space<vmem>>, vector<1x128xf32>
    %25 = vector.shape_cast %24 : vector<1x128xf32> to vector<1x128xf32>
    %26 = vector.broadcast %25 : vector<1x128xf32> to vector<8x128xf32>
    %27 = tpu.iota {dimensions = array<i32: 1>} : vector<8x128xi32>
    %c64_i32 = arith.constant 64 : i32
    %28 = vector.broadcast %c64_i32 : i32 to vector<8x128xi32>
    %29 = arith.cmpi sge, %27, %28 : vector<8x128xi32>
    %c96_i32 = arith.constant 96 : i32
    %30 = vector.broadcast %c96_i32 : i32 to vector<8x128xi32>
    %31 = arith.cmpi slt, %27, %30 : vector<8x128xi32>
    %32 = arith.andi %29, %31 : vector<8x128xi1>
    %cst_26 = arith.constant 1.000000e+00 : f32
    %cst_27 = arith.constant 5.000000e-01 : f32
    %33 = vector.broadcast %cst_26 : f32 to vector<8x128xf32>
    %34 = vector.broadcast %cst_27 : f32 to vector<8x128xf32>
    %35 = arith.select %32, %33, %34 : vector<8x128xi1>, vector<8x128xf32>
    %cst_28 = arith.constant 0.000000e+00 : f32
    %cst_29 = arith.constant 5.000000e-01 : f32
    %36 = vector.broadcast %cst_28 : f32 to vector<8x128xf32>
    %37 = vector.broadcast %cst_29 : f32 to vector<8x128xf32>
    %38 = arith.select %32, %36, %37 : vector<8x128xi1>, vector<8x128xf32>
    %cst_30 = arith.constant 0.000000e+00 : f32
    %39 = vector.broadcast %cst_30 : f32 to vector<8x128xf32>
    %cst_31 = arith.constant 0.000000e+00 : f32
    %40 = vector.broadcast %cst_31 : f32 to vector<8x128xf32>
    %41 = vector.extract_strided_slice %17 {offsets = [0, 0], sizes = [8, 128], strides = [1, 1]} : vector<64x128xf32> to vector<8x128xf32>
    %cst_32 = arith.constant dense<0.000000e+00> : vector<8x128xf32>
    %42 = tpu.matmul %39, %18, %cst_32 {dimension_numbers = #tpu.dot_dimension_numbers<[1], [0], [0], [1], [0, 0, 1, 1], [], []>} : vector<8x128xf32>, vector<128x128xf32>, vector<8x128xf32> -> vector<8x128xf32>
    %43 = arith.addf %41, %42 : vector<8x128xf32>
    %44 = math.tanh %43 : vector<8x128xf32>
    %45 = arith.mulf %44, %35 : vector<8x128xf32>
    %46 = arith.addf %45, %38 : vector<8x128xf32>
    %c96_i32_33 = arith.constant 96 : i32
    %47 = tpu.dynamic_rotate %46 by %c96_i32_33 dim 1 : vector<8x128xf32>, i32 -> vector<8x128xf32>
    %c64_i32_34 = arith.constant 64 : i32
    %48 = tpu.dynamic_rotate %46 by %c64_i32_34 dim 1 : vector<8x128xf32>, i32 -> vector<8x128xf32>
    %c32_i32 = arith.constant 32 : i32
    %49 = tpu.dynamic_rotate %46 by %c32_i32 dim 1 : vector<8x128xf32>, i32 -> vector<8x128xf32>
    %50 = arith.mulf %47, %40 : vector<8x128xf32>
    %51 = arith.mulf %46, %48 : vector<8x128xf32>
    %52 = arith.addf %50, %51 : vector<8x128xf32>
    %53 = math.tanh %52 : vector<8x128xf32>
    %54 = arith.mulf %49, %53 : vector<8x128xf32>
    %cst_35 = arith.constant dense<0.000000e+00> : vector<8x32xf32>
    %55 = tpu.matmul %54, %19, %cst_35 {dimension_numbers = #tpu.dot_dimension_numbers<[1], [0], [0], [1], [0, 0, 1, 1], [], []>} : vector<8x128xf32>, vector<128x32xf32>, vector<8x32xf32> -> vector<8x32xf32>
    %56 = arith.addf %55, %23 : vector<8x32xf32>
    %cst_36 = arith.constant 0.000000e+00 : f32
    %57 = vector.broadcast %cst_36 : f32 to vector<8x32xf32>
    %58 = arith.maximumf %56, %57 : vector<8x32xf32>
    %cst_37 = arith.constant dense<0.000000e+00> : vector<8x128xf32>
    %59 = tpu.matmul %58, %20, %cst_37 {dimension_numbers = #tpu.dot_dimension_numbers<[1], [0], [0], [1], [0, 0, 1, 1], [], []>} : vector<8x32xf32>, vector<32x128xf32>, vector<8x128xf32> -> vector<8x128xf32>
    %60 = arith.addf %59, %26 : vector<8x128xf32>
    %c0_38 = arith.constant 0 : index
    %c0_39 = arith.constant 0 : index
    %61 = vector.load %arg12[%c0_38, %c0_39] : memref<64x128xf32, #tpu.memory_space<vmem>>, vector<8x128xf32>
    tpu.vector_store %arg12[%c0_38, %c0_39], %60 {strides = array<i32>} : memref<64x128xf32, #tpu.memory_space<vmem>>, vector<8x128xf32>,
    %62 = vector.extract_strided_slice %17 {offsets = [8, 0], sizes = [8, 128], strides = [1, 1]} : vector<64x128xf32> to vector<8x128xf32>
    %cst_40 = arith.constant dense<0.000000e+00> : vector<8x128xf32>
    %63 = tpu.matmul %54, %18, %cst_40 {dimension_numbers = #tpu.dot_dimension_numbers<[1], [0], [0], [1], [0, 0, 1, 1], [], []>} : vector<8x128xf32>, vector<128x128xf32>, vector<8x128xf32> -> vector<8x128xf32>
    %64 = arith.addf %62, %63 : vector<8x128xf32>
    %65 = math.tanh %64 : vector<8x128xf32>
    %66 = arith.mulf %65, %35 : vector<8x128xf32>
    %67 = arith.addf %66, %38 : vector<8x128xf32>
    %c96_i32_41 = arith.constant 96 : i32
    %68 = tpu.dynamic_rotate %67 by %c96_i32_41 dim 1 : vector<8x128xf32>, i32 -> vector<8x128xf32>
    %c64_i32_42 = arith.constant 64 : i32
    %69 = tpu.dynamic_rotate %67 by %c64_i32_42 dim 1 : vector<8x128xf32>, i32 -> vector<8x128xf32>
    %c32_i32_43 = arith.constant 32 : i32
    %70 = tpu.dynamic_rotate %67 by %c32_i32_43 dim 1 : vector<8x128xf32>, i32 -> vector<8x128xf32>
    %71 = arith.mulf %68, %52 : vector<8x128xf32>
    %72 = arith.mulf %67, %69 : vector<8x128xf32>
    %73 = arith.addf %71, %72 : vector<8x128xf32>
    %74 = math.tanh %73 : vector<8x128xf32>
    %75 = arith.mulf %70, %74 : vector<8x128xf32>
    %cst_44 = arith.constant dense<0.000000e+00> : vector<8x32xf32>
    %76 = tpu.matmul %75, %19, %cst_44 {dimension_numbers = #tpu.dot_dimension_numbers<[1], [0], [0], [1], [0, 0, 1, 1], [], []>} : vector<8x128xf32>, vector<128x32xf32>, vector<8x32xf32> -> vector<8x32xf32>
    %77 = arith.addf %76, %23 : vector<8x32xf32>
    %cst_45 = arith.constant 0.000000e+00 : f32
    %78 = vector.broadcast %cst_45 : f32 to vector<8x32xf32>
    %79 = arith.maximumf %77, %78 : vector<8x32xf32>
    %cst_46 = arith.constant dense<0.000000e+00> : vector<8x128xf32>
    %80 = tpu.matmul %79, %20, %cst_46 {dimension_numbers = #tpu.dot_dimension_numbers<[1], [0], [0], [1], [0, 0, 1, 1], [], []>} : vector<8x32xf32>, vector<32x128xf32>, vector<8x128xf32> -> vector<8x128xf32>
    %81 = arith.addf %80, %26 : vector<8x128xf32>
    %c8 = arith.constant 8 : index
    %c0_47 = arith.constant 0 : index
    %82 = vector.load %arg12[%c8, %c0_47] : memref<64x128xf32, #tpu.memory_space<vmem>>, vector<8x128xf32>
    tpu.vector_store %arg12[%c8, %c0_47], %81 {strides = array<i32>} : memref<64x128xf32, #tpu.memory_space<vmem>>, vector<8x128xf32>,
    %83 = vector.extract_strided_slice %17 {offsets = [16, 0], sizes = [8, 128], strides = [1, 1]} : vector<64x128xf32> to vector<8x128xf32>
    %cst_48 = arith.constant dense<0.000000e+00> : vector<8x128xf32>
    %84 = tpu.matmul %75, %18, %cst_48 {dimension_numbers = #tpu.dot_dimension_numbers<[1], [0], [0], [1], [0, 0, 1, 1], [], []>} : vector<8x128xf32>, vector<128x128xf32>, vector<8x128xf32> -> vector<8x128xf32>
    %85 = arith.addf %83, %84 : vector<8x128xf32>
    %86 = math.tanh %85 : vector<8x128xf32>
    %87 = arith.mulf %86, %35 : vector<8x128xf32>
    %88 = arith.addf %87, %38 : vector<8x128xf32>
    %c96_i32_49 = arith.constant 96 : i32
    %89 = tpu.dynamic_rotate %88 by %c96_i32_49 dim 1 : vector<8x128xf32>, i32 -> vector<8x128xf32>
    %c64_i32_50 = arith.constant 64 : i32
    %90 = tpu.dynamic_rotate %88 by %c64_i32_50 dim 1 : vector<8x128xf32>, i32 -> vector<8x128xf32>
    %c32_i32_51 = arith.constant 32 : i32
    %91 = tpu.dynamic_rotate %88 by %c32_i32_51 dim 1 : vector<8x128xf32>, i32 -> vector<8x128xf32>
    %92 = arith.mulf %89, %73 : vector<8x128xf32>
    %93 = arith.mulf %88, %90 : vector<8x128xf32>
    %94 = arith.addf %92, %93 : vector<8x128xf32>
    %95 = math.tanh %94 : vector<8x128xf32>
    %96 = arith.mulf %91, %95 : vector<8x128xf32>
    %cst_52 = arith.constant dense<0.000000e+00> : vector<8x32xf32>
    %97 = tpu.matmul %96, %19, %cst_52 {dimension_numbers = #tpu.dot_dimension_numbers<[1], [0], [0], [1], [0, 0, 1, 1], [], []>} : vector<8x128xf32>, vector<128x32xf32>, vector<8x32xf32> -> vector<8x32xf32>
    %98 = arith.addf %97, %23 : vector<8x32xf32>
    %cst_53 = arith.constant 0.000000e+00 : f32
    %99 = vector.broadcast %cst_53 : f32 to vector<8x32xf32>
    %100 = arith.maximumf %98, %99 : vector<8x32xf32>
    %cst_54 = arith.constant dense<0.000000e+00> : vector<8x128xf32>
    %101 = tpu.matmul %100, %20, %cst_54 {dimension_numbers = #tpu.dot_dimension_numbers<[1], [0], [0], [1], [0, 0, 1, 1], [], []>} : vector<8x32xf32>, vector<32x128xf32>, vector<8x128xf32> -> vector<8x128xf32>
    %102 = arith.addf %101, %26 : vector<8x128xf32>
    %c16 = arith.constant 16 : index
    %c0_55 = arith.constant 0 : index
    %103 = vector.load %arg12[%c16, %c0_55] : memref<64x128xf32, #tpu.memory_space<vmem>>, vector<8x128xf32>
    tpu.vector_store %arg12[%c16, %c0_55], %102 {strides = array<i32>} : memref<64x128xf32, #tpu.memory_space<vmem>>, vector<8x128xf32>,
    %104 = vector.extract_strided_slice %17 {offsets = [24, 0], sizes = [8, 128], strides = [1, 1]} : vector<64x128xf32> to vector<8x128xf32>
    %cst_56 = arith.constant dense<0.000000e+00> : vector<8x128xf32>
    %105 = tpu.matmul %96, %18, %cst_56 {dimension_numbers = #tpu.dot_dimension_numbers<[1], [0], [0], [1], [0, 0, 1, 1], [], []>} : vector<8x128xf32>, vector<128x128xf32>, vector<8x128xf32> -> vector<8x128xf32>
    %106 = arith.addf %104, %105 : vector<8x128xf32>
    %107 = math.tanh %106 : vector<8x128xf32>
    %108 = arith.mulf %107, %35 : vector<8x128xf32>
    %109 = arith.addf %108, %38 : vector<8x128xf32>
    %c96_i32_57 = arith.constant 96 : i32
    %110 = tpu.dynamic_rotate %109 by %c96_i32_57 dim 1 : vector<8x128xf32>, i32 -> vector<8x128xf32>
    %c64_i32_58 = arith.constant 64 : i32
    %111 = tpu.dynamic_rotate %109 by %c64_i32_58 dim 1 : vector<8x128xf32>, i32 -> vector<8x128xf32>
    %c32_i32_59 = arith.constant 32 : i32
    %112 = tpu.dynamic_rotate %109 by %c32_i32_59 dim 1 : vector<8x128xf32>, i32 -> vector<8x128xf32>
    %113 = arith.mulf %110, %94 : vector<8x128xf32>
    %114 = arith.mulf %109, %111 : vector<8x128xf32>
    %115 = arith.addf %113, %114 : vector<8x128xf32>
    %116 = math.tanh %115 : vector<8x128xf32>
    %117 = arith.mulf %112, %116 : vector<8x128xf32>
    %cst_60 = arith.constant dense<0.000000e+00> : vector<8x32xf32>
    %118 = tpu.matmul %117, %19, %cst_60 {dimension_numbers = #tpu.dot_dimension_numbers<[1], [0], [0], [1], [0, 0, 1, 1], [], []>} : vector<8x128xf32>, vector<128x32xf32>, vector<8x32xf32> -> vector<8x32xf32>
    %119 = arith.addf %118, %23 : vector<8x32xf32>
    %cst_61 = arith.constant 0.000000e+00 : f32
    %120 = vector.broadcast %cst_61 : f32 to vector<8x32xf32>
    %121 = arith.maximumf %119, %120 : vector<8x32xf32>
    %cst_62 = arith.constant dense<0.000000e+00> : vector<8x128xf32>
    %122 = tpu.matmul %121, %20, %cst_62 {dimension_numbers = #tpu.dot_dimension_numbers<[1], [0], [0], [1], [0, 0, 1, 1], [], []>} : vector<8x32xf32>, vector<32x128xf32>, vector<8x128xf32> -> vector<8x128xf32>
    %123 = arith.addf %122, %26 : vector<8x128xf32>
    %c24 = arith.constant 24 : index
    %c0_63 = arith.constant 0 : index
    %124 = vector.load %arg12[%c24, %c0_63] : memref<64x128xf32, #tpu.memory_space<vmem>>, vector<8x128xf32>
    tpu.vector_store %arg12[%c24, %c0_63], %123 {strides = array<i32>} : memref<64x128xf32, #tpu.memory_space<vmem>>, vector<8x128xf32>,
    %125 = vector.extract_strided_slice %17 {offsets = [32, 0], sizes = [8, 128], strides = [1, 1]} : vector<64x128xf32> to vector<8x128xf32>
    %cst_64 = arith.constant dense<0.000000e+00> : vector<8x128xf32>
    %126 = tpu.matmul %117, %18, %cst_64 {dimension_numbers = #tpu.dot_dimension_numbers<[1], [0], [0], [1], [0, 0, 1, 1], [], []>} : vector<8x128xf32>, vector<128x128xf32>, vector<8x128xf32> -> vector<8x128xf32>
    %127 = arith.addf %125, %126 : vector<8x128xf32>
    %128 = math.tanh %127 : vector<8x128xf32>
    %129 = arith.mulf %128, %35 : vector<8x128xf32>
    %130 = arith.addf %129, %38 : vector<8x128xf32>
    %c96_i32_65 = arith.constant 96 : i32
    %131 = tpu.dynamic_rotate %130 by %c96_i32_65 dim 1 : vector<8x128xf32>, i32 -> vector<8x128xf32>
    %c64_i32_66 = arith.constant 64 : i32
    %132 = tpu.dynamic_rotate %130 by %c64_i32_66 dim 1 : vector<8x128xf32>, i32 -> vector<8x128xf32>
    %c32_i32_67 = arith.constant 32 : i32
    %133 = tpu.dynamic_rotate %130 by %c32_i32_67 dim 1 : vector<8x128xf32>, i32 -> vector<8x128xf32>
    %134 = arith.mulf %131, %115 : vector<8x128xf32>
    %135 = arith.mulf %130, %132 : vector<8x128xf32>
    %136 = arith.addf %134, %135 : vector<8x128xf32>
    %137 = math.tanh %136 : vector<8x128xf32>
    %138 = arith.mulf %133, %137 : vector<8x128xf32>
    %cst_68 = arith.constant dense<0.000000e+00> : vector<8x32xf32>
    %139 = tpu.matmul %138, %19, %cst_68 {dimension_numbers = #tpu.dot_dimension_numbers<[1], [0], [0], [1], [0, 0, 1, 1], [], []>} : vector<8x128xf32>, vector<128x32xf32>, vector<8x32xf32> -> vector<8x32xf32>
    %140 = arith.addf %139, %23 : vector<8x32xf32>
    %cst_69 = arith.constant 0.000000e+00 : f32
    %141 = vector.broadcast %cst_69 : f32 to vector<8x32xf32>
    %142 = arith.maximumf %140, %141 : vector<8x32xf32>
    %cst_70 = arith.constant dense<0.000000e+00> : vector<8x128xf32>
    %143 = tpu.matmul %142, %20, %cst_70 {dimension_numbers = #tpu.dot_dimension_numbers<[1], [0], [0], [1], [0, 0, 1, 1], [], []>} : vector<8x32xf32>, vector<32x128xf32>, vector<8x128xf32> -> vector<8x128xf32>
    %144 = arith.addf %143, %26 : vector<8x128xf32>
    %c32 = arith.constant 32 : index
    %c0_71 = arith.constant 0 : index
    %145 = vector.load %arg12[%c32, %c0_71] : memref<64x128xf32, #tpu.memory_space<vmem>>, vector<8x128xf32>
    tpu.vector_store %arg12[%c32, %c0_71], %144 {strides = array<i32>} : memref<64x128xf32, #tpu.memory_space<vmem>>, vector<8x128xf32>,
    %146 = vector.extract_strided_slice %17 {offsets = [40, 0], sizes = [8, 128], strides = [1, 1]} : vector<64x128xf32> to vector<8x128xf32>
    %cst_72 = arith.constant dense<0.000000e+00> : vector<8x128xf32>
    %147 = tpu.matmul %138, %18, %cst_72 {dimension_numbers = #tpu.dot_dimension_numbers<[1], [0], [0], [1], [0, 0, 1, 1], [], []>} : vector<8x128xf32>, vector<128x128xf32>, vector<8x128xf32> -> vector<8x128xf32>
    %148 = arith.addf %146, %147 : vector<8x128xf32>
    %149 = math.tanh %148 : vector<8x128xf32>
    %150 = arith.mulf %149, %35 : vector<8x128xf32>
    %151 = arith.addf %150, %38 : vector<8x128xf32>
    %c96_i32_73 = arith.constant 96 : i32
    %152 = tpu.dynamic_rotate %151 by %c96_i32_73 dim 1 : vector<8x128xf32>, i32 -> vector<8x128xf32>
    %c64_i32_74 = arith.constant 64 : i32
    %153 = tpu.dynamic_rotate %151 by %c64_i32_74 dim 1 : vector<8x128xf32>, i32 -> vector<8x128xf32>
    %c32_i32_75 = arith.constant 32 : i32
    %154 = tpu.dynamic_rotate %151 by %c32_i32_75 dim 1 : vector<8x128xf32>, i32 -> vector<8x128xf32>
    %155 = arith.mulf %152, %136 : vector<8x128xf32>
    %156 = arith.mulf %151, %153 : vector<8x128xf32>
    %157 = arith.addf %155, %156 : vector<8x128xf32>
    %158 = math.tanh %157 : vector<8x128xf32>
    %159 = arith.mulf %154, %158 : vector<8x128xf32>
    %cst_76 = arith.constant dense<0.000000e+00> : vector<8x32xf32>
    %160 = tpu.matmul %159, %19, %cst_76 {dimension_numbers = #tpu.dot_dimension_numbers<[1], [0], [0], [1], [0, 0, 1, 1], [], []>} : vector<8x128xf32>, vector<128x32xf32>, vector<8x32xf32> -> vector<8x32xf32>
    %161 = arith.addf %160, %23 : vector<8x32xf32>
    %cst_77 = arith.constant 0.000000e+00 : f32
    %162 = vector.broadcast %cst_77 : f32 to vector<8x32xf32>
    %163 = arith.maximumf %161, %162 : vector<8x32xf32>
    %cst_78 = arith.constant dense<0.000000e+00> : vector<8x128xf32>
    %164 = tpu.matmul %163, %20, %cst_78 {dimension_numbers = #tpu.dot_dimension_numbers<[1], [0], [0], [1], [0, 0, 1, 1], [], []>} : vector<8x32xf32>, vector<32x128xf32>, vector<8x128xf32> -> vector<8x128xf32>
    %165 = arith.addf %164, %26 : vector<8x128xf32>
    %c40 = arith.constant 40 : index
    %c0_79 = arith.constant 0 : index
    %166 = vector.load %arg12[%c40, %c0_79] : memref<64x128xf32, #tpu.memory_space<vmem>>, vector<8x128xf32>
    tpu.vector_store %arg12[%c40, %c0_79], %165 {strides = array<i32>} : memref<64x128xf32, #tpu.memory_space<vmem>>, vector<8x128xf32>,
    %167 = vector.extract_strided_slice %17 {offsets = [48, 0], sizes = [8, 128], strides = [1, 1]} : vector<64x128xf32> to vector<8x128xf32>
    %cst_80 = arith.constant dense<0.000000e+00> : vector<8x128xf32>
    %168 = tpu.matmul %159, %18, %cst_80 {dimension_numbers = #tpu.dot_dimension_numbers<[1], [0], [0], [1], [0, 0, 1, 1], [], []>} : vector<8x128xf32>, vector<128x128xf32>, vector<8x128xf32> -> vector<8x128xf32>
    %169 = arith.addf %167, %168 : vector<8x128xf32>
    %170 = math.tanh %169 : vector<8x128xf32>
    %171 = arith.mulf %170, %35 : vector<8x128xf32>
    %172 = arith.addf %171, %38 : vector<8x128xf32>
    %c96_i32_81 = arith.constant 96 : i32
    %173 = tpu.dynamic_rotate %172 by %c96_i32_81 dim 1 : vector<8x128xf32>, i32 -> vector<8x128xf32>
    %c64_i32_82 = arith.constant 64 : i32
    %174 = tpu.dynamic_rotate %172 by %c64_i32_82 dim 1 : vector<8x128xf32>, i32 -> vector<8x128xf32>
    %c32_i32_83 = arith.constant 32 : i32
    %175 = tpu.dynamic_rotate %172 by %c32_i32_83 dim 1 : vector<8x128xf32>, i32 -> vector<8x128xf32>
    %176 = arith.mulf %173, %157 : vector<8x128xf32>
    %177 = arith.mulf %172, %174 : vector<8x128xf32>
    %178 = arith.addf %176, %177 : vector<8x128xf32>
    %179 = math.tanh %178 : vector<8x128xf32>
    %180 = arith.mulf %175, %179 : vector<8x128xf32>
    %cst_84 = arith.constant dense<0.000000e+00> : vector<8x32xf32>
    %181 = tpu.matmul %180, %19, %cst_84 {dimension_numbers = #tpu.dot_dimension_numbers<[1], [0], [0], [1], [0, 0, 1, 1], [], []>} : vector<8x128xf32>, vector<128x32xf32>, vector<8x32xf32> -> vector<8x32xf32>
    %182 = arith.addf %181, %23 : vector<8x32xf32>
    %cst_85 = arith.constant 0.000000e+00 : f32
    %183 = vector.broadcast %cst_85 : f32 to vector<8x32xf32>
    %184 = arith.maximumf %182, %183 : vector<8x32xf32>
    %cst_86 = arith.constant dense<0.000000e+00> : vector<8x128xf32>
    %185 = tpu.matmul %184, %20, %cst_86 {dimension_numbers = #tpu.dot_dimension_numbers<[1], [0], [0], [1], [0, 0, 1, 1], [], []>} : vector<8x32xf32>, vector<32x128xf32>, vector<8x128xf32> -> vector<8x128xf32>
    %186 = arith.addf %185, %26 : vector<8x128xf32>
    %c48 = arith.constant 48 : index
    %c0_87 = arith.constant 0 : index
    %187 = vector.load %arg12[%c48, %c0_87] : memref<64x128xf32, #tpu.memory_space<vmem>>, vector<8x128xf32>
    tpu.vector_store %arg12[%c48, %c0_87], %186 {strides = array<i32>} : memref<64x128xf32, #tpu.memory_space<vmem>>, vector<8x128xf32>,
    %188 = vector.extract_strided_slice %17 {offsets = [56, 0], sizes = [8, 128], strides = [1, 1]} : vector<64x128xf32> to vector<8x128xf32>
    %cst_88 = arith.constant dense<0.000000e+00> : vector<8x128xf32>
    %189 = tpu.matmul %180, %18, %cst_88 {dimension_numbers = #tpu.dot_dimension_numbers<[1], [0], [0], [1], [0, 0, 1, 1], [], []>} : vector<8x128xf32>, vector<128x128xf32>, vector<8x128xf32> -> vector<8x128xf32>
    %190 = arith.addf %188, %189 : vector<8x128xf32>
    %191 = math.tanh %190 : vector<8x128xf32>
    %192 = arith.mulf %191, %35 : vector<8x128xf32>
    %193 = arith.addf %192, %38 : vector<8x128xf32>
    %c96_i32_89 = arith.constant 96 : i32
    %194 = tpu.dynamic_rotate %193 by %c96_i32_89 dim 1 : vector<8x128xf32>, i32 -> vector<8x128xf32>
    %c64_i32_90 = arith.constant 64 : i32
    %195 = tpu.dynamic_rotate %193 by %c64_i32_90 dim 1 : vector<8x128xf32>, i32 -> vector<8x128xf32>
    %c32_i32_91 = arith.constant 32 : i32
    %196 = tpu.dynamic_rotate %193 by %c32_i32_91 dim 1 : vector<8x128xf32>, i32 -> vector<8x128xf32>
    %197 = arith.mulf %194, %178 : vector<8x128xf32>
    %198 = arith.mulf %193, %195 : vector<8x128xf32>
    %199 = arith.addf %197, %198 : vector<8x128xf32>
    %200 = math.tanh %199 : vector<8x128xf32>
    %201 = arith.mulf %196, %200 : vector<8x128xf32>
    %cst_92 = arith.constant dense<0.000000e+00> : vector<8x32xf32>
    %202 = tpu.matmul %201, %19, %cst_92 {dimension_numbers = #tpu.dot_dimension_numbers<[1], [0], [0], [1], [0, 0, 1, 1], [], []>} : vector<8x128xf32>, vector<128x32xf32>, vector<8x32xf32> -> vector<8x32xf32>
    %203 = arith.addf %202, %23 : vector<8x32xf32>
    %cst_93 = arith.constant 0.000000e+00 : f32
    %204 = vector.broadcast %cst_93 : f32 to vector<8x32xf32>
    %205 = arith.maximumf %203, %204 : vector<8x32xf32>
    %cst_94 = arith.constant dense<0.000000e+00> : vector<8x128xf32>
    %206 = tpu.matmul %205, %20, %cst_94 {dimension_numbers = #tpu.dot_dimension_numbers<[1], [0], [0], [1], [0, 0, 1, 1], [], []>} : vector<8x32xf32>, vector<32x128xf32>, vector<8x128xf32> -> vector<8x128xf32>
    %207 = arith.addf %206, %26 : vector<8x128xf32>
    %c56 = arith.constant 56 : index
    %c0_95 = arith.constant 0 : index
    %208 = vector.load %arg12[%c56, %c0_95] : memref<64x128xf32, #tpu.memory_space<vmem>>, vector<8x128xf32>
    tpu.vector_store %arg12[%c56, %c0_95], %207 {strides = array<i32>} : memref<64x128xf32, #tpu.memory_space<vmem>>, vector<8x128xf32>,
    return
  }
}

</mosaic_0001>

<bundles_post_ra>
// kernel: frf_forward.1
= control target key start
LH: loop header
LB: loop body
LE: loop exit
PB: predicated region body
PF: predicated region fallthrough
CT: control target
= control target key end

     0   :  { %vm82_vm0 = vcmask 1043456   ;;  %vm57_vm1 = vcmask 31744   ;;  %v3942_v15 = vmov 0.0|0.0   ;;  %vm210_vm2 = vcmask 261120   ;;  %s3946_s28 = smov 32   ;;  %s3947_s29 = smov 96   ;;  %s4734_s1 = inlined_call_operand.vmem [shape: f32[4,32], index: 1, kind: input, shape index: {}]   ;;  %s4735_s0 = inlined_call_operand.vmem [shape: f32[64,4], index: 0, kind: input, shape index: {}]   ;;  %s4736_s3 = inlined_call_operand.vmem [shape: f32[32,16], index: 3, kind: input, shape index: {}]   ;;  %s4737_s5 = inlined_call_operand.vmem [shape: f32[16,128], index: 5, kind: input, shape index: {}]   ;;  %s4738_s2 = inlined_call_operand.vmem [shape: f32[1,32], index: 2, kind: input, shape index: {}]   ;;  %s4739_s6 = inlined_call_operand.vmem [shape: f32[128,128], index: 6, kind: input, shape index: {}]   ;;  %s4740_s4 = inlined_call_operand.vmem [shape: f32[1,16], index: 4, kind: input, shape index: {}]   ;;  %s4741_s8 = inlined_call_operand.vmem [shape: f32[128,32], index: 8, kind: input, shape index: {}]   ;;  %s4742_s7 = inlined_call_operand.vmem [shape: f32[1,128], index: 7, kind: input, shape index: {}]   ;;  %s4743_s10 = inlined_call_operand.vmem [shape: f32[32,128], index: 10, kind: input, shape index: {}]   ;;  %s4744_s9 = inlined_call_operand.vmem [shape: f32[1,32], index: 9, kind: input, shape index: {}]   ;;  %s4745_s11 = inlined_call_operand.vmem [shape: f32[1,128], index: 11, kind: input, shape index: {}]   ;;  %s4746_s12 = inlined_call_operand.vmem [shape: f32[64,128], index: 12, kind: output, shape index: {}]  }
   0x1   :  { %v49_v0 = vld [vmem:[%s4734_s1] sm:$0xf]  ;;  %v42_v2 = vld [vmem:[%s4735_s0 + $0x8] sm:$0xff]  ;;  %v43_v3 = vld [vmem:[%s4735_s0 + $0x10] sm:$0xff]  ;;  %vm3943_vm3 = vmmov 0   ;;  %vm349_vm4 = vcmask 130048  }
   0x2   :  { %v41_v1 = vld [vmem:[%s4735_s0] sm:$0xff]  ;;  %2761 = vmatprep.subr.msk.mxu0 %vm82_vm0, %v49_v0  ;;  %v200_v5 = vld [vmem:[%s4736_s3 + $0x8] sm:$0xff]  ;;  %v44_v6 = vld [vmem:[%s4735_s0 + $0x18] sm:$0xff] }
   0x3   :  { %2763 = vmatprep.mubr.msk.f32.mxu0 %vm57_vm1, %v41_v1  ;;  %2762 = vmatpush3.msk.msra.mxu0 %vm82_vm0, %v49_v0  ;;  %v199_v4 = vld [vmem:[%s4736_s3] sm:$0xff]  ;;  %v46_v9 = vld [vmem:[%s4735_s0 + $0x28] sm:$0xff]  ;;  %v47_v10 = vld [vmem:[%s4735_s0 + $0x30] sm:$0xff] }
   0x4   :  { %2764 = vmatmul.mubr.msk.f32.vlgmr.msra.gmra.mrb[0].mxu0 %vm57_vm1, %v42_v2  ;;  %v3459_v7 = vpack.c.bf16 %v200_v5, %v199_v4  ;;  %v45_v8 = vld [vmem:[%s4735_s0 + $0x20] sm:$0xff]  ;;  %v48_v11 = vld [vmem:[%s4735_s0 + $0x38] sm:$0xff]  ;;  %v201_v12 = vld [vmem:[%s4736_s3 + $0x10] sm:$0xff]  ;;  %v3944_v4 = vmov 0.0   ;;  %s3948_s0 = smov 64  }
   0x5   :  { %2766 = vmatprep.mubr.msk.f32.mxu0 %vm57_vm1, %v43_v3  ;;  %v202_v13 = vld [vmem:[%s4736_s3 + $0x18] sm:$0xff]  ;;  %v340_v16 = vld [vmem:[%s4737_s5] sm:$0xff]  ;;  %v341_v17 = vld [vmem:[%s4737_s5 + $0x8] sm:$0xff] }
   0x6   :  { %3460 = vmatprep.subr.bf16.mxu1 %v3459_v7  ;;  %v3463_v14 = vpack.c.bf16 %v202_v13, %v201_v12  ;;  %v3467_v18 = vpack.c.bf16 %v341_v17, %v340_v16  ;;  %v2380_v19 = vld [vmem:[%s4738_s2] ss:$0 sm:$0xff]  ;;  %v480_v24 = vld [vmem:[%s4739_s6 + $0x8] sm:$0xff]  ;;  %v481_v30 = vld [vmem:[%s4739_s6 + $0x10] sm:$0xff] }
   0x7   :  { %3462 = vmatpush3.bf16.msra.mxu1 %v3459_v7  ;;  %v479_v23 = vld [vmem:[%s4739_s6] sm:$0xff]  ;;  %v482_v31 = vld [vmem:[%s4739_s6 + $0x18] sm:$0xff]  ;;  %v484_v40 = vld [vmem:[%s4739_s6 + $0x28] sm:$0xff] }
   0x8   :  { %2767 = vmatmul.mubr.msk.f32.gmra.mrb[2].mxu0 %vm57_vm1, %v44_v6  ;;  %3464 = vmatprep.subr.bf16.mxu1 %v3463_v14  ;;  %v4078_v27 = vpack.c.bf16 %v480_v24, %v479_v23  ;;  %v4089_v36 = vpack.c.bf16 %v482_v31, %v481_v30  ;;  %v483_v39 = vld [vmem:[%s4739_s6 + $0x20] sm:$0xff]  ;;  %v485_v48 = vld [vmem:[%s4739_s6 + $0x30] sm:$0xff]  ;;  %v486_v49 = vld [vmem:[%s4739_s6 + $0x38] sm:$0xff] }
   0x9   :  { %2769 = vmatprep.mubr.msk.f32.mxu0 %vm57_vm1, %v45_v8  ;;  %3468 = vmatprep.subr.bf16.mxu0 %v3467_v18  ;;  %v4101_v45 = vpack.c.bf16 %v484_v40, %v483_v39  ;;  %v4113_v54 = vpack.c.bf16 %v486_v49, %v485_v48  ;;  %v487_v56 = vld [vmem:[%s4739_s6 + $0x40] sm:$0xff]  ;;  %v488_v57 = vld [vmem:[%s4739_s6 + $0x48] sm:$0xff]  ;;  %v489_v59 = vld [vmem:[%s4739_s6 + $0x50] sm:$0xff] }
   0xa   :  { %3470 = vmatpush3.bf16.msra.mxu0 %v3467_v18  ;;  %v4125_v58 = vpack.c.bf16 %v488_v57, %v487_v56  ;;  %v490_v60 = vld [vmem:[%s4739_s6 + $0x58] sm:$0xff]  ;;  %v491_v62 = vld [vmem:[%s4739_s6 + $0x60] sm:$0xff]  ;;  %v492_v63 = vld [vmem:[%s4739_s6 + $0x68] sm:$0xff] }
   0xb   :  { %3466 = vmatpush3.bf16.msra.mxu1 %v3463_v14  ;;  %3495 = vmatprep.subr.bf16.mxu0 %v3942_v15  ;;  %v4135_v61 = vpack.c.bf16 %v490_v60, %v489_v59  ;;  %v4146_v0 = vpack.c.bf16 %v492_v63, %v491_v62  ;;  %v493_v1 = vld [vmem:[%s4739_s6 + $0x70] sm:$0xff]  ;;  %v494_v2 = vld [vmem:[%s4739_s6 + $0x78] sm:$0xff]  ;;  %v2390_v5 = vld [vmem:[%s4740_s4] ss:$0 sm:$0xff] }
   0xc   :  { %2770 = vmatmul.mubr.msk.f32.gmra.mrb[4].mxu0 %vm57_vm1, %v46_v9  ;;  %3471 = vmatprep.subr.bf16.mxu1 %v3942_v15  ;;  %v4156_v3 = vpack.c.bf16 %v494_v2, %v493_v1  ;;  %v498_v30 = vld [vmem:[%s4741_s8 + $0x18] sm:$0xff]  ;;  %v503_v48 = vld [vmem:[%s4741_s8 + $0x40] sm:$0xff]  ;;  %v504_v49 = vld [vmem:[%s4741_s8 + $0x48] sm:$0xff] }
   0xd   :  { %2772 = vmatprep.mubr.msk.f32.mxu0 %vm57_vm1, %v47_v10  ;;  %v507_v60 = vld [vmem:[%s4741_s8 + $0x60] sm:$0xff]  ;;  %v508_v62 = vld [vmem:[%s4741_s8 + $0x68] sm:$0xff] }
   0xe   :  { %v4257_v1 = vpack.c.bf16 %v508_v62, %v507_v60 }
  0x10   :  { %2773 = vmatmul.mubr.msk.f32.gmra.mrb[6].mxu0 %vm57_vm1, %v48_v11 }
  0xd7   :  { %v2765_v20 = vpop.f32.mrb[0].mxu0 }
  0xd8   :  { %v158_v21 = vadd.f32 %v2765_v20, %v2380_v19  ;;  %v152_v22 = vpop.f32.mrb[1].mxu0 }
  0xd9   :  { %v153_v25 = vadd.f32 %v2380_v19, %v152_v22 }
  0xda   :  { %v192_v29 = vmax.f32 %v158_v21, 0.0 }
  0xdb   :  { %v191_v26 = vmax.f32 %v153_v25, 0.0  ;;  %v2768_v28 = vpop.f32.mrb[2].mxu0  ;;  %v495_v25 = vld [vmem:[%s4741_s8] sm:$0xff] }
  0xdc   :  { %v168_v32 = vadd.f32 %v2768_v28, %v2380_v19  ;;  %v162_v33 = vpop.f32.mrb[3].mxu0  ;;  %v497_v28 = vld [vmem:[%s4741_s8 + $0x10] sm:$0xff] }
  0xdd   :  { %2783 = vmatprep.mubr.msk.f32.mxu1 %vm210_vm2, %v191_v26  ;;  %v163_v34 = vadd.f32 %v2380_v19, %v162_v33  ;;  %v496_v26 = vld [vmem:[%s4741_s8 + $0x8] sm:$0xff]  ;;  %v4193_v31 = vpack.c.bf16 %v498_v30, %v497_v28 }
  0xde   :  { %2784 = vmatmul.mubr.msk.f32.vlgmr.msra.gmra.mrb[0].mxu1 %vm210_vm2, %v192_v29  ;;  %v194_v35 = vmax.f32 %v168_v32, 0.0  ;;  %v4187_v29 = vpack.c.bf16 %v496_v26, %v495_v25  ;;  %v499_v32 = vld [vmem:[%s4741_s8 + $0x20] sm:$0xff]  ;;  %v500_v33 = vld [vmem:[%s4741_s8 + $0x28] sm:$0xff] }
  0xdf   :  { %3473 = vmatpush3.bf16.msra.mxu1 %v4078_v27  ;;  %v193_v37 = vmax.f32 %v163_v34, 0.0  ;;  %v2771_v38 = vpop.f32.mrb[4].mxu0  ;;  %v4203_v34 = vpack.c.bf16 %v500_v33, %v499_v32 }
  0xe0   :  { %3474 = vmatprep.subr.bf16.mxu1 %v3942_v15  ;;  %v178_v41 = vadd.f32 %v2771_v38, %v2380_v19  ;;  %v172_v42 = vpop.f32.mrb[5].mxu0  ;;  %v529_v38 = vlaneseq }
  0xe1   :  { %v173_v43 = vadd.f32 %v2380_v19, %v172_v42  ;;  %2786 = vmatprep.mubr.msk.f32.mxu1 %vm210_vm2, %v193_v37 }
  0xe2   :  { %v196_v44 = vmax.f32 %v178_v41, 0.0  ;;  %2787 = vmatmul.mubr.msk.f32.gmra.mrb[2].mxu1 %vm210_vm2, %v194_v35  ;;  %v4211_v35 = vld [vmem:[%s4742_s7] ss:$0 sm:$0xff] }
  0xe3   :  { %3476 = vmatpush3.bf16.msra.mxu1 %v4089_v36  ;;  %v195_v46 = vmax.f32 %v173_v43, 0.0  ;;  %v2774_v47 = vpop.f32.mrb[6].mxu0  ;;  %v530_v43 = vand.u32 127, %v529_v38  ;;  %v514_v38 = vld [vmem:[%s4743_s10 + $0x18] sm:$0xff] }
  0xe4   :  { %3477 = vmatprep.subr.bf16.mxu1 %v3942_v15  ;;  %v188_v50 = vadd.f32 %v2774_v47, %v2380_v19  ;;  %v182_v51 = vpop.f32.mrb[7].mxu0 }
  0xe5   :  { %v183_v52 = vadd.f32 %v2380_v19, %v182_v51  ;;  %2789 = vmatprep.mubr.msk.f32.mxu1 %vm210_vm2, %v195_v46  ;;  %v502_v46 = vld [vmem:[%s4741_s8 + $0x38] sm:$0xff]  ;;  %vm531_vm5 = vcmp.ge.s32.totalorder %v530_v43, 64  ;;  %vm532_vm6 = vcmp.lt.s32.totalorder %v530_v43, 96  ;;  %v3945_v51 = vmov 0.5  }
  0xe6   :  { %v198_v53 = vmax.f32 %v188_v50, 0.0  ;;  %2790 = vmatmul.mubr.msk.f32.gmra.mrb[4].mxu1 %vm210_vm2, %v196_v44  ;;  %v501_v44 = vld [vmem:[%s4741_s8 + $0x30] sm:$0xff]  ;;  %vm533_vm7 = vmand %vm531_vm5, %vm532_vm6  ;;  %v4233_v50 = vpack.c.bf16 %v504_v49, %v503_v48  ;;  %v4369_v48 = vld [vmem:[%s4745_s11] ss:$0 sm:$0xff] }
  0xe7   :  { %3479 = vmatpush3.bf16.msra.mxu1 %v4101_v45  ;;  %v197_v55 = vmax.f32 %v183_v52, 0.0  ;;  %v4223_v47 = vpack.c.bf16 %v502_v46, %v501_v44  ;;  %v4235_v52 = vsel %vm533_vm7, 1.0, %v3945_v51  ;;  %v4245_v57 = vsel %vm533_vm7, 0.0, %v3945_v51 }
  0xe8   :  { %3480 = vmatprep.subr.bf16.mxu1 %v3942_v15 }
  0xe9   :  { %2792 = vmatprep.mubr.msk.f32.mxu1 %vm210_vm2, %v197_v55  ;;  %v506_v55 = vld [vmem:[%s4741_s8 + $0x58] sm:$0xff] }
  0xea   :  { %2793 = vmatmul.mubr.msk.f32.gmra.mrb[6].mxu1 %vm210_vm2, %v198_v53  ;;  %v505_v53 = vld [vmem:[%s4741_s8 + $0x50] sm:$0xff] }
  0xeb   :  { %3482 = vmatpush3.bf16.msra.mxu1 %v4113_v54  ;;  %2843 = vmatprep.mubr.msk.f32.mxu1 %vm3943_vm3, %v3944_v4  ;;  %v4247_v59 = vpack.c.bf16 %v506_v55, %v505_v53 }
  0xec   :  { %3483 = vmatprep.subr.bf16.mxu1 %v3942_v15 }
  0xef   :  { %3485 = vmatpush3.bf16.msra.mxu1 %v4125_v58 }
  0xf0   :  { %3486 = vmatprep.subr.bf16.mxu1 %v3942_v15 }
  0xf3   :  { %3488 = vmatpush3.bf16.msra.mxu1 %v4135_v61 }
  0xf4   :  { %3489 = vmatprep.subr.bf16.mxu1 %v3942_v15 }
  0xf7   :  { %3491 = vmatpush3.bf16.msra.mxu1 %v4146_v0 }
  0xf8   :  { %3492 = vmatprep.subr.bf16.mxu1 %v3942_v15 }
  0xfb   :  { %3494 = vmatpush3.bf16.msra.mxu1 %v4156_v3 }
  0xfc   :  { %3519 = vmatprep.subr.bf16.mxu1 %v3942_v15 }
  0xfe   :  { %2844 = vmatmul.mubr.f32.vlgmr.msra.gmra.mrb[8].mxu1 %v3944_v4 }
  0xff   :  { %2889 = vmatprep.mubr.msk.f32.mxu1 %vm3943_vm3, %v3944_v4 }
 0x1b1   :  { %v2785_v6 = vpop.f32.mrb[0].mxu1 }
 0x1b2   :  { %v301_v7 = vpop.f32.mrb[1].mxu1  ;;  %v307_v9 = vadd.f32 %v2785_v6, %v2390_v5  ;;  %v510_v6 = vld [vmem:[%s4741_s8 + $0x78] sm:$0xff] }
 0x1b3   :  { %v302_v8 = vadd.f32 %v2390_v5, %v301_v7 }
 0x1b5   :  { %2799 = vmatprep.mubr.msk.f32.mxu0 %vm349_vm4, %v302_v8  ;;  %v2788_v10 = vpop.f32.mrb[2].mxu1 }
 0x1b6   :  { %2800 = vmatmul.mubr.msk.f32.vlgmr.msra.gmra.mrb[8].mxu0 %vm349_vm4, %v307_v9  ;;  %v317_v11 = vadd.f32 %v2788_v10, %v2390_v5  ;;  %v311_v12 = vpop.f32.mrb[3].mxu1 }
 0x1b7   :  { %v312_v13 = vadd.f32 %v2390_v5, %v311_v12  ;;  %3497 = vmatpush3.bf16.msra.mxu0 %v4187_v29  ;;  %v512_v12 = vld [vmem:[%s4743_s10 + $0x8] sm:$0xff] }
 0x1b8   :  { %3498 = vmatprep.subr.bf16.mxu0 %v3942_v15 }
 0x1b9   :  { %v2791_v14 = vpop.f32.mrb[4].mxu1  ;;  %2802 = vmatprep.mubr.msk.f32.mxu0 %vm349_vm4, %v312_v13 }
 0x1ba   :  { %v327_v16 = vadd.f32 %v2791_v14, %v2390_v5  ;;  %v321_v17 = vpop.f32.mrb[5].mxu1  ;;  %2803 = vmatmul.mubr.msk.f32.gmra.mrb[10].mxu0 %vm349_vm4, %v317_v11  ;;  %v511_v11 = vld [vmem:[%s4743_s10] sm:$0xff] }
 0x1bb   :  { %v322_v18 = vadd.f32 %v2390_v5, %v321_v17  ;;  %3500 = vmatpush3.bf16.msra.mxu0 %v4193_v31 }
 0x1bc   :  { %3501 = vmatprep.subr.bf16.mxu0 %v3942_v15 }
 0x1bd   :  { %v2794_v19 = vpop.f32.mrb[6].mxu1  ;;  %2805 = vmatprep.mubr.msk.f32.mxu0 %vm349_vm4, %v322_v18 }
 0x1be   :  { %v337_v20 = vadd.f32 %v2794_v19, %v2390_v5  ;;  %v331_v21 = vpop.f32.mrb[7].mxu1  ;;  %2806 = vmatmul.mubr.msk.f32.gmra.mrb[12].mxu0 %vm349_vm4, %v327_v16  ;;  %v4288_v16 = vpack.c.bf16 %v512_v12, %v511_v11 }
 0x1bf   :  { %v332_v22 = vadd.f32 %v2390_v5, %v331_v21  ;;  %3503 = vmatpush3.bf16.msra.mxu0 %v4203_v34  ;;  %v509_v5 = vld [vmem:[%s4741_s8 + $0x70] sm:$0xff] }
 0x1c0   :  { %3504 = vmatprep.subr.bf16.mxu0 %v3942_v15  ;;  %v4270_v7 = vpack.c.bf16 %v510_v6, %v509_v5  ;;  %3521 = vmatpush3.bf16.msra.mxu1 %v4288_v16 }
 0x1c1   :  { %2808 = vmatprep.mubr.msk.f32.mxu0 %vm349_vm4, %v332_v22  ;;  %3522 = vmatprep.subr.bf16.mxu1 %v3942_v15 }
 0x1c2   :  { %2809 = vmatmul.mubr.msk.f32.gmra.mrb[14].mxu0 %vm349_vm4, %v337_v20 }
 0x1c3   :  { %2878 = vmatprep.mubr.msk.f32.mxu0 %vm3943_vm3, %v3944_v4  ;;  %3506 = vmatpush3.bf16.msra.mxu0 %v4223_v47 }
 0x1c4   :  { %3507 = vmatprep.subr.bf16.mxu0 %v3942_v15 }
 0x1c7   :  { %3509 = vmatpush3.bf16.msra.mxu0 %v4233_v50 }
 0x1c8   :  { %3510 = vmatprep.subr.bf16.mxu0 %v3942_v15 }
 0x1cb   :  { %3512 = vmatpush3.bf16.msra.mxu0 %v4247_v59 }
 0x1cc   :  { %3513 = vmatprep.subr.bf16.mxu0 %v3942_v15 }
 0x1cf   :  { %3515 = vmatpush3.bf16.msra.mxu0 %v4257_v1 }
 0x1d0   :  { %3516 = vmatprep.subr.bf16.mxu0 %v3942_v15 }
 0x1d1   :  { %v602_v23 = vpop.f32.mrb[8].mxu1 }
 0x1d2   :  { %v2845_v24 = vpop.f32.mrb[9].mxu1 }
 0x1d3   :  { %3518 = vmatpush3.bf16.msra.mxu0 %v4270_v7 }
 0x1d4   :  { %3549 = vmatprep.subr.bf16.mxu0 %v3942_v15 }
 0x289   :  { %v2801_v37 = vpop.f32.mrb[8].mxu0 }
 0x28a   :  { %v4214_v39 = vadd.f32 %v2801_v37, %v4211_v35  ;;  %v440_v40 = vpop.f32.mrb[9].mxu0 }
 0x28b   :  { %v441_v41 = vadd.f32 %v4211_v35, %v440_v40 }
 0x28d   :  { %v606_v42 = vadd.f32 %v602_v23, %v441_v41  ;;  %v2804_v8 = vpop.f32.mrb[10].mxu0  ;;  %v4338_v41 = vld [vmem:[%s4744_s9] ss:$0 sm:$0xff] }
 0x28e   :  { %v4277_v9 = vadd.f32 %v2804_v8, %v4211_v35  ;;  %v450_v10 = vpop.f32.mrb[11].mxu0 }
 0x28f   :  { %3910 = vtanh.f32 %v606_v42  ;;  %v4286_v13 = vadd.f32 %v4211_v35, %v450_v10 }
 0x291   :  { %v2807_v14 = vpop.f32.mrb[12].mxu0 }
 0x292   :  { %v4291_v17 = vadd.f32 %v2807_v14, %v4211_v35  ;;  %v460_v18 = vpop.f32.mrb[13].mxu0 }
 0x293   :  { %v4294_v19 = vadd.f32 %v4211_v35, %v460_v18 }
 0x295   :  { %v2810_v20 = vpop.f32.mrb[14].mxu0 }
 0x296   :  { %v4298_v21 = vadd.f32 %v2810_v20, %v4211_v35  ;;  %v470_v22 = vpop.f32.mrb[15].mxu0 }
 0x297   :  { %v4302_v23 = vadd.f32 %v4211_v35, %v470_v22  ;;  %v513_v35 = vld [vmem:[%s4743_s10 + $0x10] sm:$0xff] }
 0x298   :  { %v4331_v40 = vpack.c.bf16 %v514_v38, %v513_v35 }
 0x299   :  { %v3911_v56 = vpop.eup %3910 }
 0x29a   :  { %v608_v63 = vmul.f32 %v3911_v56, %v4235_v52  ;;  %3524 = vmatpush3.bf16.msra.mxu1 %v4331_v40 }
 0x29b   :  { %3525 = vmatprep.subr.bf16.mxu1 %v3942_v15 }
 0x29c   :  { %v609_v2 = vadd.f32 %v608_v63, %v4245_v57 }
 0x29e   :  { %614 = vrot.lane.b32.xlu1 %v609_v2, %s3946_s28  ;;  %610 = vrot.lane.b32.xlu0 %v609_v2, %s3947_s29 }
 0x2a2   :  { %612 = vrot.lane.b32.xlu0 %v609_v2, %s3948_s0 }
 0x310   :  { %v611_v24 = vpop.permute.xlu0 %610  ;;  %v615_v33 = vpop.permute.xlu1 %614 }
 0x311   :  { %v616_v26 = vmul.f32 0.0, %v611_v24 }
 0x314   :  { %v613_v25 = vpop.permute.xlu0 %612 }
 0x315   :  { %v617_v28 = vmul.f32 %v613_v25, %v609_v2 }
 0x317   :  { %v4304_v30 = vadd.f32 %v617_v28, %v616_v26 }
 0x319   :  { %3912 = vtanh.f32 %v4304_v30 }
 0x323   :  { %v3913_v32 = vpop.eup %3912 }
 0x324   :  { %v620_v37 = vmul.f32 %v3913_v32, %v615_v33 }
 0x326   :  { %2879 = vmatmul.mubr.f32.vlgmr.msra.gmra.mrb[16].mxu0 %v620_v37 }
 0x327   :  { %3551 = vmatpush3.bf16.msra.mxu0 %v4187_v29  ;;  %2959 = vmatprep.mubr.msk.f32.mxu0 %vm3943_vm3, %v3944_v4 }
 0x328   :  { %3552 = vmatprep.subr.bf16.mxu0 %v3942_v15 }
 0x32b   :  { %3554 = vmatpush3.bf16.msra.mxu0 %v4193_v31 }
 0x32c   :  { %3555 = vmatprep.subr.bf16.mxu0 %v3942_v15 }
 0x32f   :  { %3557 = vmatpush3.bf16.msra.mxu0 %v4203_v34 }
 0x330   :  { %3558 = vmatprep.subr.bf16.mxu0 %v3942_v15 }
 0x333   :  { %3560 = vmatpush3.bf16.msra.mxu0 %v4223_v47 }
 0x334   :  { %3561 = vmatprep.subr.bf16.mxu0 %v3942_v15 }
 0x337   :  { %3563 = vmatpush3.bf16.msra.mxu0 %v4233_v50 }
 0x338   :  { %3564 = vmatprep.subr.bf16.mxu0 %v3942_v15 }
 0x33b   :  { %3566 = vmatpush3.bf16.msra.mxu0 %v4247_v59 }
 0x33c   :  { %3567 = vmatprep.subr.bf16.mxu0 %v3942_v15 }
 0x33f   :  { %3569 = vmatpush3.bf16.msra.mxu0 %v4257_v1 }
 0x340   :  { %3570 = vmatprep.subr.bf16.mxu0 %v3942_v15 }
 0x343   :  { %3572 = vmatpush3.bf16.msra.mxu0 %v4270_v7 }
 0x344   :  { %3579 = vmatprep.subr.bf16.mxu0 %v3942_v15 }
 0x3f9   :  { %v687_v42 = vpop.f32.mrb[16].mxu0 }
 0x3fa   :  { %v688_v43 = vadd.f32 %v4338_v41, %v687_v42  ;;  %v2880_v44 = vpop.f32.mrb[17].mxu0 }
 0x3fc   :  { %v691_v46 = vmax.f32 %v688_v43, 0.0 }
 0x3fe   :  { %2890 = vmatmul.mubr.msk.f32.vlgmr.msra.gmra.mrb[10].mxu1 %vm210_vm2, %v691_v46 }
 0x3ff   :  { %3527 = vmatpush3.bf16.msra.mxu1 %v4078_v27  ;;  %2924 = vmatprep.mubr.msk.f32.mxu1 %vm3943_vm3, %v3944_v4 }
 0x400   :  { %3528 = vmatprep.subr.bf16.mxu1 %v3942_v15 }
 0x403   :  { %3530 = vmatpush3.bf16.msra.mxu1 %v4089_v36 }
 0x404   :  { %3531 = vmatprep.subr.bf16.mxu1 %v3942_v15 }
 0x407   :  { %3533 = vmatpush3.bf16.msra.mxu1 %v4101_v45 }
 0x408   :  { %3534 = vmatprep.subr.bf16.mxu1 %v3942_v15 }
 0x40b   :  { %3536 = vmatpush3.bf16.msra.mxu1 %v4113_v54 }
 0x40c   :  { %3537 = vmatprep.subr.bf16.mxu1 %v3942_v15 }
 0x40f   :  { %3539 = vmatpush3.bf16.msra.mxu1 %v4125_v58 }
 0x410   :  { %3540 = vmatprep.subr.bf16.mxu1 %v3942_v15 }
 0x413   :  { %3542 = vmatpush3.bf16.msra.mxu1 %v4135_v61 }
 0x414   :  { %3543 = vmatprep.subr.bf16.mxu1 %v3942_v15 }
 0x417   :  { %3545 = vmatpush3.bf16.msra.mxu1 %v4146_v0 }
 0x418   :  { %3546 = vmatprep.subr.bf16.mxu1 %v3942_v15 }
 0x41b   :  { %3548 = vmatpush3.bf16.msra.mxu1 %v4156_v3 }
 0x41c   :  { %3573 = vmatprep.subr.bf16.mxu1 %v3942_v15 }
 0x41e   :  { %2925 = vmatmul.mubr.f32.vlgmr.msra.gmra.mrb[12].mxu1 %v620_v37 }
 0x41f   :  { %3575 = vmatpush3.bf16.msra.mxu1 %v4288_v16  ;;  %2970 = vmatprep.mubr.msk.f32.mxu1 %vm3943_vm3, %v3944_v4 }
 0x420   :  { %3576 = vmatprep.subr.bf16.mxu1 %v3942_v15 }
 0x423   :  { %3578 = vmatpush3.bf16.msra.mxu1 %v4331_v40 }
 0x424   :  { %3603 = vmatprep.subr.bf16.mxu1 %v3942_v15 }
 0x4d1   :  { %v761_v49 = vpop.f32.mrb[10].mxu1 }
 0x4d2   :  { %v762_v51 = vadd.f32 %v4369_v48, %v761_v49  ;;  %v2891_v53 = vpop.f32.mrb[11].mxu1 }
 0x4d4   :  { %765 = vst [vmem:[%s4746_s12] sm:$0xff] %v762_v51 }
 0x4f1   :  { %v832_v55 = vpop.f32.mrb[12].mxu1 }
 0x4f2   :  { %v836_v56 = vadd.f32 %v832_v55, %v4214_v39  ;;  %v2926_v60 = vpop.f32.mrb[13].mxu1 }
 0x4f4   :  { %3914 = vtanh.f32 %v836_v56 }
 0x4fe   :  { %v3915_v62 = vpop.eup %3914 }
 0x4ff   :  { %v838_v63 = vmul.f32 %v3915_v62, %v4235_v52 }
 0x501   :  { %v839_v2 = vadd.f32 %v838_v63, %v4245_v57 }
 0x503   :  { %842 = vrot.lane.b32.xlu0 %v839_v2, %s3948_s0  ;;  %840 = vrot.lane.b32.xlu1 %v839_v2, %s3947_s29 }
 0x507   :  { %844 = vrot.lane.b32.xlu1 %v839_v2, %s3946_s28 }
 0x575   :  { %v843_v5 = vpop.permute.xlu0 %842  ;;  %v841_v6 = vpop.permute.xlu1 %840 }
 0x576   :  { %v847_v8 = vmul.f32 %v843_v5, %v839_v2  ;;  %v846_v10 = vmul.f32 %v841_v6, %v4304_v30 }
 0x578   :  { %v4382_v11 = vadd.f32 %v847_v8, %v846_v10 }
 0x579   :  { %v845_v12 = vpop.permute.xlu1 %844 }
 0x57a   :  { %3916 = vtanh.f32 %v4382_v11 }
 0x584   :  { %v3917_v39 = vpop.eup %3916 }
 0x585   :  { %v850_v14 = vmul.f32 %v3917_v39, %v845_v12 }
 0x587   :  { %2960 = vmatmul.mubr.f32.vlgmr.msra.gmra.mrb[18].mxu0 %v850_v14 }
 0x588   :  { %3581 = vmatpush3.bf16.msra.mxu0 %v4078_v27  ;;  %3005 = vmatprep.mubr.msk.f32.mxu0 %vm3943_vm3, %v3944_v4 }
 0x589   :  { %3582 = vmatprep.subr.bf16.mxu0 %v3942_v15 }
 0x58c   :  { %3584 = vmatpush3.bf16.msra.mxu0 %v4089_v36 }
 0x58d   :  { %3585 = vmatprep.subr.bf16.mxu0 %v3942_v15 }
 0x590   :  { %3587 = vmatpush3.bf16.msra.mxu0 %v4101_v45 }
 0x591   :  { %3588 = vmatprep.subr.bf16.mxu0 %v3942_v15 }
 0x594   :  { %3590 = vmatpush3.bf16.msra.mxu0 %v4113_v54 }
 0x595   :  { %3591 = vmatprep.subr.bf16.mxu0 %v3942_v15 }
 0x598   :  { %3593 = vmatpush3.bf16.msra.mxu0 %v4125_v58 }
 0x599   :  { %3594 = vmatprep.subr.bf16.mxu0 %v3942_v15 }
 0x59c   :  { %3596 = vmatpush3.bf16.msra.mxu0 %v4135_v61 }
 0x59d   :  { %3597 = vmatprep.subr.bf16.mxu0 %v3942_v15 }
 0x5a0   :  { %3599 = vmatpush3.bf16.msra.mxu0 %v4146_v0 }
 0x5a1   :  { %3600 = vmatprep.subr.bf16.mxu0 %v3942_v15 }
 0x5a4   :  { %3602 = vmatpush3.bf16.msra.mxu0 %v4156_v3 }
 0x5a5   :  { %3627 = vmatprep.subr.bf16.mxu0 %v3942_v15 }
 0x5a7   :  { %3006 = vmatmul.mubr.f32.vlgmr.msra.gmra.mrb[20].mxu0 %v850_v14 }
 0x5a8   :  { %3629 = vmatpush3.bf16.msra.mxu0 %v4288_v16  ;;  %3051 = vmatprep.mubr.msk.f32.mxu0 %vm3943_vm3, %v3944_v4 }
 0x5a9   :  { %3630 = vmatprep.subr.bf16.mxu0 %v3942_v15 }
 0x5ac   :  { %3632 = vmatpush3.bf16.msra.mxu0 %v4331_v40 }
 0x5ad   :  { %3657 = vmatprep.subr.bf16.mxu0 %v3942_v15 }
 0x65a   :  { %v917_v18 = vpop.f32.mrb[18].mxu0 }
 0x65b   :  { %v918_v20 = vadd.f32 %v4338_v41, %v917_v18  ;;  %v2961_v22 = vpop.f32.mrb[19].mxu0 }
 0x65d   :  { %v921_v24 = vmax.f32 %v918_v20, 0.0 }
 0x65f   :  { %2971 = vmatmul.mubr.msk.f32.vlgmr.msra.gmra.mrb[14].mxu1 %vm210_vm2, %v921_v24 }
 0x660   :  { %3605 = vmatpush3.bf16.msra.mxu1 %v4187_v29  ;;  %3040 = vmatprep.mubr.msk.f32.mxu1 %vm3943_vm3, %v3944_v4 }
 0x661   :  { %3606 = vmatprep.subr.bf16.mxu1 %v3942_v15 }
 0x664   :  { %3608 = vmatpush3.bf16.msra.mxu1 %v4193_v31 }
 0x665   :  { %3609 = vmatprep.subr.bf16.mxu1 %v3942_v15 }
 0x668   :  { %3611 = vmatpush3.bf16.msra.mxu1 %v4203_v34 }
 0x669   :  { %3612 = vmatprep.subr.bf16.mxu1 %v3942_v15 }
 0x66c   :  { %3614 = vmatpush3.bf16.msra.mxu1 %v4223_v47 }
 0x66d   :  { %3615 = vmatprep.subr.bf16.mxu1 %v3942_v15 }
 0x670   :  { %3617 = vmatpush3.bf16.msra.mxu1 %v4233_v50 }
 0x671   :  { %3618 = vmatprep.subr.bf16.mxu1 %v3942_v15 }
 0x674   :  { %3620 = vmatpush3.bf16.msra.mxu1 %v4247_v59 }
 0x675   :  { %3621 = vmatprep.subr.bf16.mxu1 %v3942_v15 }
 0x678   :  { %3623 = vmatpush3.bf16.msra.mxu1 %v4257_v1 }
 0x679   :  { %3624 = vmatprep.subr.bf16.mxu1 %v3942_v15 }
 0x67a   :  { %v1062_v25 = vpop.f32.mrb[20].mxu0 }
 0x67b   :  { %v1066_v26 = vadd.f32 %v1062_v25, %v4286_v13  ;;  %v3007_v28 = vpop.f32.mrb[21].mxu0 }
 0x67c   :  { %3626 = vmatpush3.bf16.msra.mxu1 %v4270_v7 }
 0x67d   :  { %3918 = vtanh.f32 %v1066_v26  ;;  %3633 = vmatprep.subr.bf16.mxu1 %v3942_v15 }
 0x687   :  { %v3919_v30 = vpop.eup %3918 }
 0x688   :  { %v1068_v32 = vmul.f32 %v3919_v30, %v4235_v52 }
 0x68a   :  { %v1069_v33 = vadd.f32 %v1068_v32, %v4245_v57 }
 0x68c   :  { %1072 = vrot.lane.b32.xlu1 %v1069_v33, %s3948_s0  ;;  %1070 = vrot.lane.b32.xlu0 %v1069_v33, %s3947_s29 }
 0x690   :  { %1074 = vrot.lane.b32.xlu0 %v1069_v33, %s3946_s28 }
 0x6fe   :  { %v1073_v37 = vpop.permute.xlu1 %1072  ;;  %v1071_v35 = vpop.permute.xlu0 %1070 }
 0x6ff   :  { %v1077_v13 = vmul.f32 %v1073_v37, %v1069_v33  ;;  %v1076_v38 = vmul.f32 %v1071_v35, %v4382_v11 }
 0x701   :  { %v4436_v42 = vadd.f32 %v1077_v13, %v1076_v38 }
 0x702   :  { %v1075_v44 = vpop.permute.xlu0 %1074 }
 0x703   :  { %3920 = vtanh.f32 %v4436_v42 }
 0x70d   :  { %v3921_v43 = vpop.eup %3920 }
 0x70e   :  { %v1080_v46 = vmul.f32 %v3921_v43, %v1075_v44 }
 0x710   :  { %3041 = vmatmul.mubr.f32.vlgmr.msra.gmra.mrb[16].mxu1 %v1080_v46 }
 0x711   :  { %3635 = vmatpush3.bf16.msra.mxu1 %v4078_v27  ;;  %3086 = vmatprep.mubr.msk.f32.mxu1 %vm3943_vm3, %v3944_v4 }
 0x712   :  { %3636 = vmatprep.subr.bf16.mxu1 %v3942_v15 }
 0x715   :  { %3638 = vmatpush3.bf16.msra.mxu1 %v4089_v36 }
 0x716   :  { %3639 = vmatprep.subr.bf16.mxu1 %v3942_v15 }
 0x719   :  { %3641 = vmatpush3.bf16.msra.mxu1 %v4101_v45 }
 0x71a   :  { %3642 = vmatprep.subr.bf16.mxu1 %v3942_v15 }
 0x71d   :  { %3644 = vmatpush3.bf16.msra.mxu1 %v4113_v54 }
 0x71e   :  { %3645 = vmatprep.subr.bf16.mxu1 %v3942_v15 }
 0x721   :  { %3647 = vmatpush3.bf16.msra.mxu1 %v4125_v58 }
 0x722   :  { %3648 = vmatprep.subr.bf16.mxu1 %v3942_v15 }
 0x725   :  { %3650 = vmatpush3.bf16.msra.mxu1 %v4135_v61 }
 0x726   :  { %3651 = vmatprep.subr.bf16.mxu1 %v3942_v15 }
 0x729   :  { %3653 = vmatpush3.bf16.msra.mxu1 %v4146_v0 }
 0x72a   :  { %3654 = vmatprep.subr.bf16.mxu1 %v3942_v15 }
 0x72d   :  { %3656 = vmatpush3.bf16.msra.mxu1 %v4156_v3 }
 0x72e   :  { %3681 = vmatprep.subr.bf16.mxu1 %v3942_v15 }
 0x730   :  { %3087 = vmatmul.mubr.f32.vlgmr.msra.gmra.mrb[18].mxu1 %v1080_v46 }
 0x731   :  { %3683 = vmatpush3.bf16.msra.mxu1 %v4288_v16  ;;  %3132 = vmatprep.mubr.msk.f32.mxu1 %vm3943_vm3, %v3944_v4 }
 0x732   :  { %v991_v49 = vpop.f32.mrb[14].mxu1  ;;  %3684 = vmatprep.subr.bf16.mxu1 %v3942_v15 }
 0x733   :  { %v992_v51 = vadd.f32 %v4369_v48, %v991_v49  ;;  %v2972_v53 = vpop.f32.mrb[15].mxu1 }
 0x735   :  { %995 = vst [vmem:[%s4746_s12 + $0x8] sm:$0xff] %v992_v51  ;;  %3686 = vmatpush3.bf16.msra.mxu1 %v4331_v40 }
 0x736   :  { %3711 = vmatprep.subr.bf16.mxu1 %v3942_v15 }
 0x7e3   :  { %v1147_v55 = vpop.f32.mrb[16].mxu1 }
 0x7e4   :  { %v1148_v56 = vadd.f32 %v4338_v41, %v1147_v55  ;;  %v3042_v60 = vpop.f32.mrb[17].mxu1 }
 0x7e6   :  { %v1151_v62 = vmax.f32 %v1148_v56, 0.0 }
 0x7e8   :  { %3052 = vmatmul.mubr.msk.f32.vlgmr.msra.gmra.mrb[22].mxu0 %vm210_vm2, %v1151_v62 }
 0x7e9   :  { %3659 = vmatpush3.bf16.msra.mxu0 %v4187_v29  ;;  %3121 = vmatprep.mubr.msk.f32.mxu0 %vm3943_vm3, %v3944_v4 }
 0x7ea   :  { %3660 = vmatprep.subr.bf16.mxu0 %v3942_v15 }
 0x7ed   :  { %3662 = vmatpush3.bf16.msra.mxu0 %v4193_v31 }
 0x7ee   :  { %3663 = vmatprep.subr.bf16.mxu0 %v3942_v15 }
 0x7f1   :  { %3665 = vmatpush3.bf16.msra.mxu0 %v4203_v34 }
 0x7f2   :  { %3666 = vmatprep.subr.bf16.mxu0 %v3942_v15 }
 0x7f5   :  { %3668 = vmatpush3.bf16.msra.mxu0 %v4223_v47 }
 0x7f6   :  { %3669 = vmatprep.subr.bf16.mxu0 %v3942_v15 }
 0x7f9   :  { %3671 = vmatpush3.bf16.msra.mxu0 %v4233_v50 }
 0x7fa   :  { %3672 = vmatprep.subr.bf16.mxu0 %v3942_v15 }
 0x7fd   :  { %3674 = vmatpush3.bf16.msra.mxu0 %v4247_v59 }
 0x7fe   :  { %3675 = vmatprep.subr.bf16.mxu0 %v3942_v15 }
 0x801   :  { %3677 = vmatpush3.bf16.msra.mxu0 %v4257_v1 }
 0x802   :  { %3678 = vmatprep.subr.bf16.mxu0 %v3942_v15 }
 0x803   :  { %v1292_v63 = vpop.f32.mrb[18].mxu1 }
 0x804   :  { %v1296_v2 = vadd.f32 %v1292_v63, %v4277_v9  ;;  %v3088_v5 = vpop.f32.mrb[19].mxu1 }
 0x805   :  { %3680 = vmatpush3.bf16.msra.mxu0 %v4270_v7 }
 0x806   :  { %3922 = vtanh.f32 %v1296_v2  ;;  %3687 = vmatprep.subr.bf16.mxu0 %v3942_v15 }
 0x810   :  { %v3923_v6 = vpop.eup %3922 }
 0x811   :  { %v1298_v8 = vmul.f32 %v3923_v6, %v4235_v52 }
 0x813   :  { %v1299_v10 = vadd.f32 %v1298_v8, %v4245_v57 }
 0x815   :  { %1302 = vrot.lane.b32.xlu0 %v1299_v10, %s3948_s0  ;;  %1300 = vrot.lane.b32.xlu1 %v1299_v10, %s3947_s29 }
 0x819   :  { %1304 = vrot.lane.b32.xlu1 %v1299_v10, %s3946_s28 }
 0x887   :  { %v1303_v11 = vpop.permute.xlu0 %1302  ;;  %v1301_v39 = vpop.permute.xlu1 %1300 }
 0x888   :  { %v1307_v9 = vmul.f32 %v1303_v11, %v1299_v10  ;;  %v1306_v12 = vmul.f32 %v1301_v39, %v4436_v42 }
 0x88a   :  { %v4494_v14 = vadd.f32 %v1307_v9, %v1306_v12 }
 0x88b   :  { %v1305_v20 = vpop.permute.xlu1 %1304 }
 0x88c   :  { %3924 = vtanh.f32 %v4494_v14 }
 0x896   :  { %v3925_v18 = vpop.eup %3924 }
 0x897   :  { %v1310_v22 = vmul.f32 %v3925_v18, %v1305_v20 }
 0x899   :  { %3122 = vmatmul.mubr.f32.vlgmr.msra.gmra.mrb[24].mxu0 %v1310_v22 }
 0x89a   :  { %3689 = vmatpush3.bf16.msra.mxu0 %v4078_v27  ;;  %3167 = vmatprep.mubr.msk.f32.mxu0 %vm3943_vm3, %v3944_v4 }
 0x89b   :  { %3690 = vmatprep.subr.bf16.mxu0 %v3942_v15 }
 0x89e   :  { %3692 = vmatpush3.bf16.msra.mxu0 %v4089_v36 }
 0x89f   :  { %3693 = vmatprep.subr.bf16.mxu0 %v3942_v15 }
 0x8a2   :  { %3695 = vmatpush3.bf16.msra.mxu0 %v4101_v45 }
 0x8a3   :  { %3696 = vmatprep.subr.bf16.mxu0 %v3942_v15 }
 0x8a6   :  { %3698 = vmatpush3.bf16.msra.mxu0 %v4113_v54 }
 0x8a7   :  { %3699 = vmatprep.subr.bf16.mxu0 %v3942_v15 }
 0x8aa   :  { %3701 = vmatpush3.bf16.msra.mxu0 %v4125_v58 }
 0x8ab   :  { %3702 = vmatprep.subr.bf16.mxu0 %v3942_v15 }
 0x8ae   :  { %3704 = vmatpush3.bf16.msra.mxu0 %v4135_v61 }
 0x8af   :  { %3705 = vmatprep.subr.bf16.mxu0 %v3942_v15 }
 0x8b2   :  { %3707 = vmatpush3.bf16.msra.mxu0 %v4146_v0 }
 0x8b3   :  { %3708 = vmatprep.subr.bf16.mxu0 %v3942_v15 }
 0x8b6   :  { %3710 = vmatpush3.bf16.msra.mxu0 %v4156_v3 }
 0x8b7   :  { %3735 = vmatprep.subr.bf16.mxu0 %v3942_v15 }
 0x8b9   :  { %3168 = vmatmul.mubr.f32.vlgmr.msra.gmra.mrb[26].mxu0 %v1310_v22 }
 0x8ba   :  { %3737 = vmatpush3.bf16.msra.mxu0 %v4288_v16  ;;  %3213 = vmatprep.mubr.msk.f32.mxu0 %vm3943_vm3, %v3944_v4 }
 0x8bb   :  { %v1221_v24 = vpop.f32.mrb[22].mxu0  ;;  %3738 = vmatprep.subr.bf16.mxu0 %v3942_v15 }
 0x8bc   :  { %v1222_v25 = vadd.f32 %v4369_v48, %v1221_v24  ;;  %v3053_v26 = vpop.f32.mrb[23].mxu0 }
 0x8be   :  { %1225 = vst [vmem:[%s4746_s12 + $0x10] sm:$0xff] %v1222_v25  ;;  %3740 = vmatpush3.bf16.msra.mxu0 %v4331_v40 }
 0x8bf   :  { %3765 = vmatprep.subr.bf16.mxu0 %v3942_v15 }
 0x96c   :  { %v1377_v28 = vpop.f32.mrb[24].mxu0 }
 0x96d   :  { %v1378_v30 = vadd.f32 %v4338_v41, %v1377_v28  ;;  %v3123_v32 = vpop.f32.mrb[25].mxu0 }
 0x96f   :  { %v1381_v33 = vmax.f32 %v1378_v30, 0.0 }
 0x971   :  { %3133 = vmatmul.mubr.msk.f32.vlgmr.msra.gmra.mrb[20].mxu1 %vm210_vm2, %v1381_v33 }
 0x972   :  { %3713 = vmatpush3.bf16.msra.mxu1 %v4187_v29  ;;  %3202 = vmatprep.mubr.msk.f32.mxu1 %vm3943_vm3, %v3944_v4 }
 0x973   :  { %3714 = vmatprep.subr.bf16.mxu1 %v3942_v15 }
 0x976   :  { %3716 = vmatpush3.bf16.msra.mxu1 %v4193_v31 }
 0x977   :  { %3717 = vmatprep.subr.bf16.mxu1 %v3942_v15 }
 0x97a   :  { %3719 = vmatpush3.bf16.msra.mxu1 %v4203_v34 }
 0x97b   :  { %3720 = vmatprep.subr.bf16.mxu1 %v3942_v15 }
 0x97e   :  { %3722 = vmatpush3.bf16.msra.mxu1 %v4223_v47 }
 0x97f   :  { %3723 = vmatprep.subr.bf16.mxu1 %v3942_v15 }
 0x982   :  { %3725 = vmatpush3.bf16.msra.mxu1 %v4233_v50 }
 0x983   :  { %3726 = vmatprep.subr.bf16.mxu1 %v3942_v15 }
 0x986   :  { %3728 = vmatpush3.bf16.msra.mxu1 %v4247_v59 }
 0x987   :  { %3729 = vmatprep.subr.bf16.mxu1 %v3942_v15 }
 0x98a   :  { %3731 = vmatpush3.bf16.msra.mxu1 %v4257_v1 }
 0x98b   :  { %3732 = vmatprep.subr.bf16.mxu1 %v3942_v15 }
 0x98c   :  { %v1522_v37 = vpop.f32.mrb[26].mxu0 }
 0x98d   :  { %v1526_v35 = vadd.f32 %v1522_v37, %v4294_v19  ;;  %v3169_v13 = vpop.f32.mrb[27].mxu0 }
 0x98e   :  { %3734 = vmatpush3.bf16.msra.mxu1 %v4270_v7 }
 0x98f   :  { %3926 = vtanh.f32 %v1526_v35  ;;  %3741 = vmatprep.subr.bf16.mxu1 %v3942_v15 }
 0x999   :  { %v3927_v38 = vpop.eup %3926 }
 0x99a   :  { %v1528_v42 = vmul.f32 %v3927_v38, %v4235_v52 }
 0x99c   :  { %v1529_v43 = vadd.f32 %v1528_v42, %v4245_v57 }
 0x99e   :  { %1532 = vrot.lane.b32.xlu1 %v1529_v43, %s3948_s0  ;;  %1530 = vrot.lane.b32.xlu0 %v1529_v43, %s3947_s29 }
 0x9a2   :  { %1534 = vrot.lane.b32.xlu0 %v1529_v43, %s3946_s28 }
 0xa10   :  { %v1533_v44 = vpop.permute.xlu1 %1532  ;;  %v1531_v46 = vpop.permute.xlu0 %1530 }
 0xa11   :  { %v1537_v19 = vmul.f32 %v1533_v44, %v1529_v43  ;;  %v1536_v49 = vmul.f32 %v1531_v46, %v4494_v14 }
 0xa13   :  { %v4552_v51 = vadd.f32 %v1537_v19, %v1536_v49 }
 0xa14   :  { %v1535_v55 = vpop.permute.xlu0 %1534 }
 0xa15   :  { %3928 = vtanh.f32 %v4552_v51 }
 0xa1f   :  { %v3929_v53 = vpop.eup %3928 }
 0xa20   :  { %v1540_v56 = vmul.f32 %v3929_v53, %v1535_v55 }
 0xa22   :  { %3203 = vmatmul.mubr.f32.vlgmr.msra.gmra.mrb[22].mxu1 %v1540_v56 }
 0xa23   :  { %3743 = vmatpush3.bf16.msra.mxu1 %v4078_v27  ;;  %3248 = vmatprep.mubr.msk.f32.mxu1 %vm3943_vm3, %v3944_v4 }
 0xa24   :  { %3744 = vmatprep.subr.bf16.mxu1 %v3942_v15 }
 0xa27   :  { %3746 = vmatpush3.bf16.msra.mxu1 %v4089_v36 }
 0xa28   :  { %3747 = vmatprep.subr.bf16.mxu1 %v3942_v15 }
 0xa2b   :  { %3749 = vmatpush3.bf16.msra.mxu1 %v4101_v45 }
 0xa2c   :  { %3750 = vmatprep.subr.bf16.mxu1 %v3942_v15 }
 0xa2f   :  { %3752 = vmatpush3.bf16.msra.mxu1 %v4113_v54 }
 0xa30   :  { %3753 = vmatprep.subr.bf16.mxu1 %v3942_v15 }
 0xa33   :  { %3755 = vmatpush3.bf16.msra.mxu1 %v4125_v58 }
 0xa34   :  { %3756 = vmatprep.subr.bf16.mxu1 %v3942_v15 }
 0xa37   :  { %3758 = vmatpush3.bf16.msra.mxu1 %v4135_v61 }
 0xa38   :  { %3759 = vmatprep.subr.bf16.mxu1 %v3942_v15 }
 0xa3b   :  { %3761 = vmatpush3.bf16.msra.mxu1 %v4146_v0 }
 0xa3c   :  { %3762 = vmatprep.subr.bf16.mxu1 %v3942_v15 }
 0xa3f   :  { %3764 = vmatpush3.bf16.msra.mxu1 %v4156_v3 }
 0xa40   :  { %3789 = vmatprep.subr.bf16.mxu1 %v3942_v15 }
 0xa42   :  { %3249 = vmatmul.mubr.f32.vlgmr.msra.gmra.mrb[24].mxu1 %v1540_v56 }
 0xa43   :  { %3791 = vmatpush3.bf16.msra.mxu1 %v4288_v16  ;;  %3294 = vmatprep.mubr.msk.f32.mxu1 %vm3943_vm3, %v3944_v4 }
 0xa44   :  { %v1451_v60 = vpop.f32.mrb[20].mxu1  ;;  %3792 = vmatprep.subr.bf16.mxu1 %v3942_v15 }
 0xa45   :  { %v1452_v62 = vadd.f32 %v4369_v48, %v1451_v60  ;;  %v3134_v63 = vpop.f32.mrb[21].mxu1 }
 0xa47   :  { %1455 = vst [vmem:[%s4746_s12 + $0x18] sm:$0xff] %v1452_v62  ;;  %3794 = vmatpush3.bf16.msra.mxu1 %v4331_v40 }
 0xa48   :  { %3819 = vmatprep.subr.bf16.mxu1 %v3942_v15 }
 0xaf5   :  { %v1607_v2 = vpop.f32.mrb[22].mxu1 }
 0xaf6   :  { %v1608_v5 = vadd.f32 %v4338_v41, %v1607_v2  ;;  %v3204_v6 = vpop.f32.mrb[23].mxu1 }
 0xaf8   :  { %v1611_v8 = vmax.f32 %v1608_v5, 0.0 }
 0xafa   :  { %3214 = vmatmul.mubr.msk.f32.vlgmr.msra.gmra.mrb[28].mxu0 %vm210_vm2, %v1611_v8 }
 0xafb   :  { %3767 = vmatpush3.bf16.msra.mxu0 %v4187_v29  ;;  %3283 = vmatprep.mubr.msk.f32.mxu0 %vm3943_vm3, %v3944_v4 }
 0xafc   :  { %3768 = vmatprep.subr.bf16.mxu0 %v3942_v15 }
 0xaff   :  { %3770 = vmatpush3.bf16.msra.mxu0 %v4193_v31 }
 0xb00   :  { %3771 = vmatprep.subr.bf16.mxu0 %v3942_v15 }
 0xb03   :  { %3773 = vmatpush3.bf16.msra.mxu0 %v4203_v34 }
 0xb04   :  { %3774 = vmatprep.subr.bf16.mxu0 %v3942_v15 }
 0xb07   :  { %3776 = vmatpush3.bf16.msra.mxu0 %v4223_v47 }
 0xb08   :  { %3777 = vmatprep.subr.bf16.mxu0 %v3942_v15 }
 0xb0b   :  { %3779 = vmatpush3.bf16.msra.mxu0 %v4233_v50 }
 0xb0c   :  { %3780 = vmatprep.subr.bf16.mxu0 %v3942_v15 }
 0xb0f   :  { %3782 = vmatpush3.bf16.msra.mxu0 %v4247_v59 }
 0xb10   :  { %3783 = vmatprep.subr.bf16.mxu0 %v3942_v15 }
 0xb13   :  { %3785 = vmatpush3.bf16.msra.mxu0 %v4257_v1 }
 0xb14   :  { %3786 = vmatprep.subr.bf16.mxu0 %v3942_v15 }
 0xb15   :  { %v1752_v10 = vpop.f32.mrb[24].mxu1 }
 0xb16   :  { %v1756_v11 = vadd.f32 %v1752_v10, %v4291_v17  ;;  %v3250_v39 = vpop.f32.mrb[25].mxu1 }
 0xb17   :  { %3788 = vmatpush3.bf16.msra.mxu0 %v4270_v7 }
 0xb18   :  { %3930 = vtanh.f32 %v1756_v11  ;;  %3795 = vmatprep.subr.bf16.mxu0 %v3942_v15 }
 0xb22   :  { %v3931_v9 = vpop.eup %3930 }
 0xb23   :  { %v1758_v12 = vmul.f32 %v3931_v9, %v4235_v52 }
 0xb25   :  { %v1759_v14 = vadd.f32 %v1758_v12, %v4245_v57 }
 0xb27   :  { %1762 = vrot.lane.b32.xlu0 %v1759_v14, %s3948_s0  ;;  %1760 = vrot.lane.b32.xlu1 %v1759_v14, %s3947_s29 }
 0xb2b   :  { %1764 = vrot.lane.b32.xlu1 %v1759_v14, %s3946_s28 }
 0xb99   :  { %v1763_v18 = vpop.permute.xlu0 %1762  ;;  %v1761_v20 = vpop.permute.xlu1 %1760 }
 0xb9a   :  { %v1767_v17 = vmul.f32 %v1763_v18, %v1759_v14  ;;  %v1766_v22 = vmul.f32 %v1761_v20, %v4552_v51 }
 0xb9c   :  { %v4610_v24 = vadd.f32 %v1767_v17, %v1766_v22 }
 0xb9d   :  { %v1765_v26 = vpop.permute.xlu1 %1764 }
 0xb9e   :  { %3932 = vtanh.f32 %v4610_v24 }
 0xba8   :  { %v3933_v25 = vpop.eup %3932 }
 0xba9   :  { %v1770_v28 = vmul.f32 %v3933_v25, %v1765_v26 }
 0xbab   :  { %3284 = vmatmul.mubr.f32.vlgmr.msra.gmra.mrb[30].mxu0 %v1770_v28 }
 0xbac   :  { %3797 = vmatpush3.bf16.msra.mxu0 %v4078_v27  ;;  %3329 = vmatprep.mubr.msk.f32.mxu0 %vm3943_vm3, %v3944_v4 }
 0xbad   :  { %3798 = vmatprep.subr.bf16.mxu0 %v3942_v15 }
 0xbb0   :  { %3800 = vmatpush3.bf16.msra.mxu0 %v4089_v36 }
 0xbb1   :  { %3801 = vmatprep.subr.bf16.mxu0 %v3942_v15 }
 0xbb4   :  { %3803 = vmatpush3.bf16.msra.mxu0 %v4101_v45 }
 0xbb5   :  { %3804 = vmatprep.subr.bf16.mxu0 %v3942_v15 }
 0xbb8   :  { %3806 = vmatpush3.bf16.msra.mxu0 %v4113_v54 }
 0xbb9   :  { %3807 = vmatprep.subr.bf16.mxu0 %v3942_v15 }
 0xbbc   :  { %3809 = vmatpush3.bf16.msra.mxu0 %v4125_v58 }
 0xbbd   :  { %3810 = vmatprep.subr.bf16.mxu0 %v3942_v15 }
 0xbc0   :  { %3812 = vmatpush3.bf16.msra.mxu0 %v4135_v61 }
 0xbc1   :  { %3813 = vmatprep.subr.bf16.mxu0 %v3942_v15 }
 0xbc4   :  { %3815 = vmatpush3.bf16.msra.mxu0 %v4146_v0 }
 0xbc5   :  { %3816 = vmatprep.subr.bf16.mxu0 %v3942_v15 }
 0xbc8   :  { %3818 = vmatpush3.bf16.msra.mxu0 %v4156_v3 }
 0xbc9   :  { %3843 = vmatprep.subr.bf16.mxu0 %v3942_v15 }
 0xbcb   :  { %3330 = vmatmul.mubr.f32.vlgmr.msra.gmra.mrb[32].mxu0 %v1770_v28 }
 0xbcc   :  { %3845 = vmatpush3.bf16.msra.mxu0 %v4288_v16  ;;  %3375 = vmatprep.mubr.msk.f32.mxu0 %vm3943_vm3, %v3944_v4 }
 0xbcd   :  { %v1681_v30 = vpop.f32.mrb[28].mxu0  ;;  %3846 = vmatprep.subr.bf16.mxu0 %v3942_v15 }
 0xbce   :  { %v1682_v32 = vadd.f32 %v4369_v48, %v1681_v30  ;;  %v3215_v33 = vpop.f32.mrb[29].mxu0 }
 0xbd0   :  { %1685 = vst [vmem:[%s4746_s12 + $0x20] sm:$0xff] %v1682_v32  ;;  %3848 = vmatpush3.bf16.msra.mxu0 %v4331_v40 }
 0xbd1   :  { %3873 = vmatprep.subr.bf16.mxu0 %v3942_v15 }
 0xc7e   :  { %v1837_v37 = vpop.f32.mrb[30].mxu0 }
 0xc7f   :  { %v1838_v35 = vadd.f32 %v4338_v41, %v1837_v37  ;;  %v3285_v13 = vpop.f32.mrb[31].mxu0 }
 0xc81   :  { %v1841_v38 = vmax.f32 %v1838_v35, 0.0 }
 0xc83   :  { %3295 = vmatmul.mubr.msk.f32.vlgmr.msra.gmra.mrb[26].mxu1 %vm210_vm2, %v1841_v38 }
 0xc84   :  { %3821 = vmatpush3.bf16.msra.mxu1 %v4187_v29  ;;  %3364 = vmatprep.mubr.msk.f32.mxu1 %vm3943_vm3, %v3944_v4 }
 0xc85   :  { %3822 = vmatprep.subr.bf16.mxu1 %v3942_v15 }
 0xc88   :  { %3824 = vmatpush3.bf16.msra.mxu1 %v4193_v31 }
 0xc89   :  { %3825 = vmatprep.subr.bf16.mxu1 %v3942_v15 }
 0xc8c   :  { %3827 = vmatpush3.bf16.msra.mxu1 %v4203_v34 }
 0xc8d   :  { %3828 = vmatprep.subr.bf16.mxu1 %v3942_v15 }
 0xc90   :  { %3830 = vmatpush3.bf16.msra.mxu1 %v4223_v47 }
 0xc91   :  { %3831 = vmatprep.subr.bf16.mxu1 %v3942_v15 }
 0xc94   :  { %3833 = vmatpush3.bf16.msra.mxu1 %v4233_v50 }
 0xc95   :  { %3834 = vmatprep.subr.bf16.mxu1 %v3942_v15 }
 0xc98   :  { %3836 = vmatpush3.bf16.msra.mxu1 %v4247_v59 }
 0xc99   :  { %3837 = vmatprep.subr.bf16.mxu1 %v3942_v15 }
 0xc9c   :  { %3839 = vmatpush3.bf16.msra.mxu1 %v4257_v1 }
 0xc9d   :  { %3840 = vmatprep.subr.bf16.mxu1 %v3942_v15 }
 0xc9e   :  { %v1982_v42 = vpop.f32.mrb[32].mxu0 }
 0xc9f   :  { %v1986_v43 = vadd.f32 %v1982_v42, %v4302_v23  ;;  %v3331_v44 = vpop.f32.mrb[33].mxu0 }
 0xca0   :  { %3842 = vmatpush3.bf16.msra.mxu1 %v4270_v7 }
 0xca1   :  { %3934 = vtanh.f32 %v1986_v43  ;;  %3849 = vmatprep.subr.bf16.mxu1 %v3942_v15 }
 0xcab   :  { %v3935_v46 = vpop.eup %3934 }
 0xcac   :  { %v1988_v19 = vmul.f32 %v3935_v46, %v4235_v52 }
 0xcae   :  { %v1989_v49 = vadd.f32 %v1988_v19, %v4245_v57 }
 0xcb0   :  { %1992 = vrot.lane.b32.xlu1 %v1989_v49, %s3948_s0  ;;  %1990 = vrot.lane.b32.xlu0 %v1989_v49, %s3947_s29 }
 0xcb4   :  { %1994 = vrot.lane.b32.xlu0 %v1989_v49, %s3946_s28 }
 0xd22   :  { %v1993_v51 = vpop.permute.xlu1 %1992  ;;  %v1991_v53 = vpop.permute.xlu0 %1990 }
 0xd23   :  { %v1997_v23 = vmul.f32 %v1993_v51, %v1989_v49  ;;  %v1996_v55 = vmul.f32 %v1991_v53, %v4610_v24 }
 0xd25   :  { %v4668_v56 = vadd.f32 %v1997_v23, %v1996_v55 }
 0xd26   :  { %v1995_v62 = vpop.permute.xlu0 %1994 }
 0xd27   :  { %3936 = vtanh.f32 %v4668_v56 }
 0xd31   :  { %v3937_v60 = vpop.eup %3936 }
 0xd32   :  { %v2000_v63 = vmul.f32 %v3937_v60, %v1995_v62 }
 0xd34   :  { %3365 = vmatmul.mubr.f32.vlgmr.msra.gmra.mrb[28].mxu1 %v2000_v63 }
 0xd35   :  { %3851 = vmatpush3.bf16.msra.mxu1 %v4078_v27  ;;  %3410 = vmatprep.mubr.msk.f32.mxu1 %vm3943_vm3, %v3944_v4 }
 0xd36   :  { %3852 = vmatprep.subr.bf16.mxu1 %v3942_v15 }
 0xd39   :  { %3854 = vmatpush3.bf16.msra.mxu1 %v4089_v36 }
 0xd3a   :  { %3855 = vmatprep.subr.bf16.mxu1 %v3942_v15 }
 0xd3d   :  { %3857 = vmatpush3.bf16.msra.mxu1 %v4101_v45 }
 0xd3e   :  { %3858 = vmatprep.subr.bf16.mxu1 %v3942_v15 }
 0xd41   :  { %3860 = vmatpush3.bf16.msra.mxu1 %v4113_v54 }
 0xd42   :  { %3861 = vmatprep.subr.bf16.mxu1 %v3942_v15 }
 0xd45   :  { %3863 = vmatpush3.bf16.msra.mxu1 %v4125_v58 }
 0xd46   :  { %3864 = vmatprep.subr.bf16.mxu1 %v3942_v15 }
 0xd49   :  { %3866 = vmatpush3.bf16.msra.mxu1 %v4135_v61 }
 0xd4a   :  { %3867 = vmatprep.subr.bf16.mxu1 %v3942_v15 }
 0xd4d   :  { %3869 = vmatpush3.bf16.msra.mxu1 %v4146_v0 }
 0xd4e   :  { %3870 = vmatprep.subr.bf16.mxu1 %v3942_v15 }
 0xd51   :  { %3872 = vmatpush3.bf16.msra.mxu1 %v4156_v3 }
 0xd52   :  { %3897 = vmatprep.subr.bf16.mxu1 %v3942_v15 }
 0xd54   :  { %3411 = vmatmul.mubr.f32.vlgmr.msra.gmra.mrb[30].mxu1 %v2000_v63 }
 0xd55   :  { %3899 = vmatpush3.bf16.msra.mxu1 %v4288_v16  ;;  %3456 = vmatprep.mubr.msk.f32.mxu1 %vm3943_vm3, %v3944_v4 }
 0xd56   :  { %v1911_v27 = vpop.f32.mrb[26].mxu1  ;;  %3900 = vmatprep.subr.bf16.mxu1 %v3942_v15 }
 0xd57   :  { %v1912_v36 = vadd.f32 %v4369_v48, %v1911_v27  ;;  %v3296_v45 = vpop.f32.mrb[27].mxu1 }
 0xd59   :  { %1915 = vst [vmem:[%s4746_s12 + $0x28] sm:$0xff] %v1912_v36  ;;  %3902 = vmatpush3.bf16.msra.mxu1 %v4331_v40 }
 0xe07   :  { %v2067_v54 = vpop.f32.mrb[28].mxu1 }
 0xe08   :  { %v2068_v58 = vadd.f32 %v4338_v41, %v2067_v54  ;;  %v3366_v61 = vpop.f32.mrb[29].mxu1 }
 0xe0a   :  { %v2071_v0 = vmax.f32 %v2068_v58, 0.0 }
 0xe0c   :  { %3376 = vmatmul.mubr.msk.f32.vlgmr.msra.gmra.mrb[34].mxu0 %vm210_vm2, %v2071_v0 }
 0xe0d   :  { %3875 = vmatpush3.bf16.msra.mxu0 %v4187_v29  ;;  %3445 = vmatprep.mubr.msk.f32.mxu0 %vm3943_vm3, %v3944_v4 }
 0xe0e   :  { %3876 = vmatprep.subr.bf16.mxu0 %v3942_v15 }
 0xe11   :  { %3878 = vmatpush3.bf16.msra.mxu0 %v4193_v31 }
 0xe12   :  { %3879 = vmatprep.subr.bf16.mxu0 %v3942_v15 }
 0xe15   :  { %3881 = vmatpush3.bf16.msra.mxu0 %v4203_v34 }
 0xe16   :  { %3882 = vmatprep.subr.bf16.mxu0 %v3942_v15 }
 0xe19   :  { %3884 = vmatpush3.bf16.msra.mxu0 %v4223_v47 }
 0xe1a   :  { %3885 = vmatprep.subr.bf16.mxu0 %v3942_v15 }
 0xe1d   :  { %3887 = vmatpush3.bf16.msra.mxu0 %v4233_v50 }
 0xe1e   :  { %3888 = vmatprep.subr.bf16.mxu0 %v3942_v15 }
 0xe21   :  { %3890 = vmatpush3.bf16.msra.mxu0 %v4247_v59 }
 0xe22   :  { %3891 = vmatprep.subr.bf16.mxu0 %v3942_v15 }
 0xe25   :  { %3893 = vmatpush3.bf16.msra.mxu0 %v4257_v1 }
 0xe26   :  { %3894 = vmatprep.subr.bf16.mxu0 %v3942_v15 }
 0xe27   :  { %v2212_v3 = vpop.f32.mrb[30].mxu1 }
 0xe28   :  { %v2216_v4 = vadd.f32 %v2212_v3, %v4298_v21  ;;  %v3412_v29 = vpop.f32.mrb[31].mxu1 }
 0xe29   :  { %3896 = vmatpush3.bf16.msra.mxu0 %v4270_v7 }
 0xe2a   :  { %3938 = vtanh.f32 %v2216_v4 }
 0xe34   :  { %v3939_v31 = vpop.eup %3938 }
 0xe35   :  { %v2218_v34 = vmul.f32 %v3939_v31, %v4235_v52 }
 0xe37   :  { %v2219_v47 = vadd.f32 %v2218_v34, %v4245_v57 }
 0xe39   :  { %2222 = vrot.lane.b32.xlu0 %v2219_v47, %s3948_s0  ;;  %2220 = vrot.lane.b32.xlu1 %v2219_v47, %s3947_s29 }
 0xe3d   :  { %2224 = vrot.lane.b32.xlu1 %v2219_v47, %s3946_s28 }
 0xeab   :  { %v2223_v50 = vpop.permute.xlu0 %2222  ;;  %v2221_v15 = vpop.permute.xlu1 %2220 }
 0xeac   :  { %v2227_v59 = vmul.f32 %v2223_v50, %v2219_v47  ;;  %v2226_v1 = vmul.f32 %v2221_v15, %v4668_v56 }
 0xeae   :  { %v2228_v16 = vadd.f32 %v2227_v59, %v2226_v1 }
 0xeaf   :  { %v2225_v21 = vpop.permute.xlu1 %2224 }
 0xeb0   :  { %3940 = vtanh.f32 %v2228_v16 }
 0xeba   :  { %v3941_v7 = vpop.eup %3940 }
 0xebb   :  { %v2230_v40 = vmul.f32 %v3941_v7, %v2225_v21 }
 0xebd   :  { %3446 = vmatmul.mubr.f32.vlgmr.msra.gmra.mrb[36].mxu0 %v2230_v40 }
 0xedf   :  { %v2141_v52 = vpop.f32.mrb[34].mxu0 }
 0xee0   :  { %v2142_v57 = vadd.f32 %v4369_v48, %v2141_v52  ;;  %v3377_v2 = vpop.f32.mrb[35].mxu0 }
 0xee2   :  { %2145 = vst [vmem:[%s4746_s12 + $0x30] sm:$0xff] %v2142_v57 }
 0xf90   :  { %v2297_v5 = vpop.f32.mrb[36].mxu0 }
 0xf91   :  { %v2298_v6 = vadd.f32 %v4338_v41, %v2297_v5  ;;  %v3447_v8 = vpop.f32.mrb[37].mxu0 }
 0xf93   :  { %v2301_v10 = vmax.f32 %v2298_v6, 0.0 }
 0xf95   :  { %3457 = vmatmul.mubr.msk.f32.vlgmr.msra.gmra.mrb[32].mxu1 %vm210_vm2, %v2301_v10 }
0x1068   :  { %v2371_v11 = vpop.f32.mrb[32].mxu1 }
0x1069   :  { %v2372_v39 = vadd.f32 %v4369_v48, %v2371_v11  ;;  %v3458_v9 = vpop.f32.mrb[33].mxu1 }
0x106b   :  { %2375 = vst [vmem:[%s4746_s12 + $0x38] sm:$0xff] %v2372_v39 }

</bundles_post_ra>
